<compile_context>
chip_gen: v7x
topology: tpu7x:2x2x1
jax: 0.10.0
libtpu: 0.0.40
codegen_flags: <defaults>
</compile_context>

<pallas_src>
import jax
import jax.numpy as jnp
from jax.experimental import pallas as pl
from jax.experimental.pallas import tpu as pltpu


def basic_block_kernel(x_ref, w1_ref, b1_ref, w2_ref, b2_ref, out_ref):
    """One full image per grid step.

    x_ref  : (H, W, Cin)       bf16  input image (channels on the lane axis)
    w1_ref : (9*Cin, Cout)     bf16  conv1 weights, BN1 scale folded, (ky,kx,ci) flat
    b1_ref : (1, Cout)         f32   folded BN1 bias
    w2_ref : (9*Cout, Cout)    bf16  conv2 weights, BN2 scale folded
    b2_ref : (1, Cout)         f32   folded BN2 bias
    out_ref: (H*W, Cout)       bf16
    """
    H, W, Cin = x_ref.shape
    Cout = w2_ref.shape[1]

    def im2col_3x3(a, c):
        # a: (H, W, c) -> (H*W, 9*c) patches of the 3x3 'SAME' (zero-padded)
        # neighbourhood; K index = (ky*3 + kx)*c + channel.
        zcol = jnp.zeros((H, 1, c), a.dtype)
        left = jnp.concatenate([zcol, a[:, :W - 1, :]], axis=1)    # col x-1 (zero @ x=0)
        right = jnp.concatenate([a[:, 1:, :], zcol], axis=1)       # col x+1 (zero @ x=W-1)
        wide = jnp.concatenate([left, a, right], axis=-1)          # (H, W, 3c)
        zrow = jnp.zeros((1, W, 3 * c), a.dtype)
        tall = jnp.concatenate([zrow, wide, zrow], axis=0)         # (H+2, W, 3c)
        patch = jnp.concatenate(
            [tall[0:H], tall[1:H + 1], tall[2:H + 2]], axis=-1)    # (H, W, 9c)
        return patch.reshape(H * W, 9 * c)

    x = x_ref[...]                                                 # (H, W, Cin) bf16

    # ---- conv1 (BN1 scale already in the weights) + bias + ReLU ----
    p1 = im2col_3x3(x, Cin)
    y1 = jnp.dot(p1, w1_ref[...], preferred_element_type=jnp.float32)
    y1 = jnp.maximum(y1 + b1_ref[...], 0.0)
    y1 = y1.astype(x.dtype).reshape(H, W, Cout)                    # bf16 for the MXU

    # ---- conv2 + bias + residual (same resident block) + ReLU ----
    p2 = im2col_3x3(y1, Cout)
    y2 = jnp.dot(p2, w2_ref[...], preferred_element_type=jnp.float32)
    ident = x.astype(jnp.float32).reshape(H * W, Cin)              # Cin == Cout (no downsample)
    out = jnp.maximum(y2 + b2_ref[...] + ident, 0.0)
    out_ref[...] = out.astype(out_ref.dtype)


def basic_block_forward_nhwc(x_nhwc, w1, scale1, bias1, w2, scale2, bias2):
    """Kernel-native entry point.  x_nhwc: (N, H, W, C); returns (N, H, W, C) bf16."""
    N, H, W, C = x_nhwc.shape
    Cout = w1.shape[0]
    assert Cout == C, "no downsample branch: inplanes must equal planes"
    # TODO(synk): stride>1 / dilation>1 / downsample branch not implemented
    #             (module defaults: stride=1, dilation=1, downsample=None).
    # Full-image tiles: guard against images too large for a single VMEM-resident tile.
    # TODO(synk): add row tiling when this fires (not needed for any BasicBlock stage).
    assert H * W * 9 * max(C, Cout) * 2 < 24 * 2 ** 20, "image too large for full-H tile"

    cdt = jnp.bfloat16  # bf16 activations/weights at the boundary, f32 MXU accumulation
    x_b = x_nhwc.astype(cdt)

    # Fold BN scale into the conv weights; lay out as ((ky, kx, cin) flat, cout) so the
    # whole 3x3 neighbourhood is one MXU contraction of depth 9*Cin.
    w1_k = (jnp.transpose(w1 * scale1[:, None, None, None], (2, 3, 1, 0))
            .reshape(9 * C, Cout).astype(cdt))
    w2_k = (jnp.transpose(w2 * scale2[:, None, None, None], (2, 3, 1, 0))
            .reshape(9 * Cout, Cout).astype(cdt))
    b1 = bias1.reshape(1, Cout).astype(jnp.float32)
    b2 = bias2.reshape(1, Cout).astype(jnp.float32)

    out_flat = pl.pallas_call(
        basic_block_kernel,
        out_shape=jax.ShapeDtypeStruct((N, H * W, Cout), cdt),
        grid_spec=pltpu.PrefetchScalarGridSpec(
            num_scalar_prefetch=0,
            grid=(N,),
            in_specs=[
                pl.BlockSpec((None, H, W, C), lambda b: (b, 0, 0, 0)),
                pl.BlockSpec((9 * C, Cout), lambda b: (0, 0)),
                pl.BlockSpec((1, Cout), lambda b: (0, 0)),
                pl.BlockSpec((9 * Cout, Cout), lambda b: (0, 0)),
                pl.BlockSpec((1, Cout), lambda b: (0, 0)),
            ],
            out_specs=pl.BlockSpec((None, H * W, Cout), lambda b: (b, 0, 0)),
        ),
        compiler_params=pltpu.CompilerParams(
            dimension_semantics=("parallel",),
        ),
    )(x_b, w1_k, b1, w2_k, b2)

    # (N, H*W, C) -> (N, H, W, C): same row-major linear order, metadata-only reshape.
    return out_flat.reshape(N, H, W, Cout)


def basic_block_forward(x_nchw, w1, scale1, bias1, w2, scale2, bias2):
    """NCHW/f32 adapter matching the PyTorch module interface.

    The transposes/cast here are interface plumbing only; keep surrounding graphs
    NHWC/bf16 and call basic_block_forward_nhwc directly to avoid them.
    """
    x_nhwc = jnp.transpose(x_nchw, (0, 2, 3, 1))
    out = basic_block_forward_nhwc(x_nhwc, w1, scale1, bias1, w2, scale2, bias2)
    return jnp.transpose(out.astype(jnp.float32), (0, 3, 1, 2))


def reference_forward(x, w1, scale1, bias1, w2, scale2, bias2):
    """Pure-JAX NCHW reference with the same bf16 input/weight rounding as the kernel."""
    f32 = jnp.float32
    xb = x.astype(jnp.bfloat16).astype(f32)
    w1f = (w1 * scale1[:, None, None, None]).astype(jnp.bfloat16).astype(f32)
    w2f = (w2 * scale2[:, None, None, None]).astype(jnp.bfloat16).astype(f32)
    dn = ('NCHW', 'OIHW', 'NCHW')
    hi = jax.lax.Precision.HIGHEST
    out = jax.lax.conv_general_dilated(xb, w1f, (1, 1), 'SAME',
                                       dimension_numbers=dn, precision=hi)
    out = jnp.maximum(out + bias1[None, :, None, None], 0.0)
    out = out.astype(jnp.bfloat16).astype(f32)  # kernel feeds conv2 in bf16
    out = jax.lax.conv_general_dilated(out, w2f, (1, 1), 'SAME',
                                       dimension_numbers=dn, precision=hi)
    out = out + bias2[None, :, None, None]
    return jnp.maximum(out + xb, 0.0)


if __name__ == "__main__":
    key = jax.random.PRNGKey(0)
    N, C, H, W = 2, 4, 16, 16   # inplanes = planes = 4, stride = 1, dilation = 1
    eps = 1e-5

    ks = jax.random.split(key, 12)
    x = jax.random.normal(ks[0], (N, C, H, W), jnp.float32)

    # conv weights (Cout, Cin, 3, 3), bias=False as in the module
    w1 = 0.1 * jax.random.normal(ks[1], (C, C, 3, 3), jnp.float32)
    w2 = 0.1 * jax.random.normal(ks[2], (C, C, 3, 3), jnp.float32)

    # BatchNorm params (inference mode: fold gamma/beta/running stats)
    # TODO(synk): training-mode batch statistics are not reproduced; BN is folded.
    g1 = 1.0 + 0.1 * jax.random.normal(ks[3], (C,), jnp.float32)
    be1 = 0.1 * jax.random.normal(ks[4], (C,), jnp.float32)
    rm1 = 0.1 * jax.random.normal(ks[5], (C,), jnp.float32)
    rv1 = 1.0 + 0.1 * jnp.abs(jax.random.normal(ks[6], (C,), jnp.float32))
    g2 = 1.0 + 0.1 * jax.random.normal(ks[7], (C,), jnp.float32)
    be2 = 0.1 * jax.random.normal(ks[8], (C,), jnp.float32)
    rm2 = 0.1 * jax.random.normal(ks[9], (C,), jnp.float32)
    rv2 = 1.0 + 0.1 * jnp.abs(jax.random.normal(ks[10], (C,), jnp.float32))

    scale1 = g1 / jnp.sqrt(rv1 + eps)
    bias1 = be1 - rm1 * scale1
    scale2 = g2 / jnp.sqrt(rv2 + eps)
    bias2 = be2 - rm2 * scale2

    out = basic_block_forward(x, w1, scale1, bias1, w2, scale2, bias2)
    out = jax.block_until_ready(out)

    ref = reference_forward(x, w1, scale1, bias1, w2, scale2, bias2)
    assert out.shape == (N, C, H, W)
    max_err = float(jnp.max(jnp.abs(out - ref)))
    # Tolerance covers the kernel's bf16 output rounding on top of the modelled
    # bf16 intermediate rounding (documented precision contract).
    assert jnp.allclose(out, ref, atol=3e-2, rtol=3e-2), (
        f"mismatch vs reference (max abs err {max_err})")

    print("KERNEL_OK")
</pallas_src>

<mosaic_0001>
module attributes {stable_mosaic.version = 11 : i64} {
  func.func @basic_block_kernel(%arg0: i32, %arg1: memref<1x16x16x4xbf16, #tpu.memory_space<vmem>>, %arg2: memref<36x4xbf16, #tpu.memory_space<vmem>>, %arg3: memref<1x4xf32, #tpu.memory_space<vmem>>, %arg4: memref<36x4xbf16, #tpu.memory_space<vmem>>, %arg5: memref<1x4xf32, #tpu.memory_space<vmem>>, %arg6: memref<1x256x4xbf16, #tpu.memory_space<vmem>>) attributes {dimension_semantics = [#tpu.dimension_semantics<parallel>], iteration_bounds = array<i64: 2>, scalar_prefetch = 0 : i64, scratch_operands = 0 : i64, tpu.core_type = #tpu.core_type<tc>, window_params = [{transform_indices = @transform_0, window_bounds = array<i64: 1, 16, 16, 4>}, {pipeline_mode = #tpu.pipeline_mode<synchronous>, transform_indices = @transform_1, window_bounds = array<i64: 36, 4>}, {pipeline_mode = #tpu.pipeline_mode<synchronous>, transform_indices = @transform_2, window_bounds = array<i64: 1, 4>}, {pipeline_mode = #tpu.pipeline_mode<synchronous>, transform_indices = @transform_3, window_bounds = array<i64: 36, 4>}, {pipeline_mode = #tpu.pipeline_mode<synchronous>, transform_indices = @transform_4, window_bounds = array<i64: 1, 4>}, {transform_indices = @transform_5, window_bounds = array<i64: 1, 256, 4>}]} {
    %c0 = arith.constant 0 : index
    %c0_0 = arith.constant 0 : index
    %c0_1 = arith.constant 0 : index
    %c0_2 = arith.constant 0 : index
    %0 = vector.load %arg1[%c0, %c0_0, %c0_1, %c0_2] : memref<1x16x16x4xbf16, #tpu.memory_space<vmem>>, vector<1x16x16x4xbf16>
    %1 = vector.shape_cast %0 : vector<1x16x16x4xbf16> to vector<16x16x4xbf16>
    %cst = arith.constant 0.000000e+00 : bf16
    %2 = vector.broadcast %cst : bf16 to vector<16x1x4xbf16>
    %3 = vector.extract_strided_slice %1 {offsets = [0, 0, 0], sizes = [16, 15, 4], strides = [1, 1, 1]} : vector<16x16x4xbf16> to vector<16x15x4xbf16>
    %4 = tpu.concatenate %2, %3 in 1 : vector<16x1x4xbf16>, vector<16x15x4xbf16> -> vector<16x16x4xbf16>
    %5 = vector.extract_strided_slice %1 {offsets = [0, 1, 0], sizes = [16, 15, 4], strides = [1, 1, 1]} : vector<16x16x4xbf16> to vector<16x15x4xbf16>
    %6 = tpu.concatenate %5, %2 in 1 : vector<16x15x4xbf16>, vector<16x1x4xbf16> -> vector<16x16x4xbf16>
    %7 = tpu.concatenate %4, %1, %6 in 2 : vector<16x16x4xbf16>, vector<16x16x4xbf16>, vector<16x16x4xbf16> -> vector<16x16x12xbf16>
    %cst_3 = arith.constant 0.000000e+00 : bf16
    %8 = vector.broadcast %cst_3 : bf16 to vector<1x16x12xbf16>
    %9 = tpu.concatenate %8, %7, %8 in 0 : vector<1x16x12xbf16>, vector<16x16x12xbf16>, vector<1x16x12xbf16> -> vector<18x16x12xbf16>
    %10 = vector.extract_strided_slice %9 {offsets = [0, 0, 0], sizes = [16, 16, 12], strides = [1, 1, 1]} : vector<18x16x12xbf16> to vector<16x16x12xbf16>
    %11 = vector.extract_strided_slice %9 {offsets = [1, 0, 0], sizes = [16, 16, 12], strides = [1, 1, 1]} : vector<18x16x12xbf16> to vector<16x16x12xbf16>
    %12 = vector.extract_strided_slice %9 {offsets = [2, 0, 0], sizes = [16, 16, 12], strides = [1, 1, 1]} : vector<18x16x12xbf16> to vector<16x16x12xbf16>
    %13 = tpu.concatenate %10, %11, %12 in 2 : vector<16x16x12xbf16>, vector<16x16x12xbf16>, vector<16x16x12xbf16> -> vector<16x16x36xbf16>
    %14 = vector.shape_cast %13 : vector<16x16x36xbf16> to vector<256x36xbf16>
    %c0_4 = arith.constant 0 : index
    %c0_5 = arith.constant 0 : index
    %15 = vector.load %arg2[%c0_4, %c0_5] : memref<36x4xbf16, #tpu.memory_space<vmem>>, vector<36x4xbf16>
    %cst_6 = arith.constant dense<0.000000e+00> : vector<256x4xf32>
    %16 = tpu.matmul %14, %15, %cst_6 {dimension_numbers = #tpu.dot_dimension_numbers<[1], [0], [0], [1], [0, 0, 1, 1], [], []>} : vector<256x36xbf16>, vector<36x4xbf16>, vector<256x4xf32> -> vector<256x4xf32>
    %c0_7 = arith.constant 0 : index
    %c0_8 = arith.constant 0 : index
    %17 = vector.load %arg3[%c0_7, %c0_8] : memref<1x4xf32, #tpu.memory_space<vmem>>, vector<1x4xf32>
    %18 = vector.broadcast %17 : vector<1x4xf32> to vector<256x4xf32>
    %19 = arith.addf %16, %18 : vector<256x4xf32>
    %cst_9 = arith.constant 0.000000e+00 : f32
    %20 = vector.broadcast %cst_9 : f32 to vector<256x4xf32>
    %21 = arith.maximumf %19, %20 : vector<256x4xf32>
    %22 = arith.truncf %21 : vector<256x4xf32> to vector<256x4xbf16>
    %23 = vector.shape_cast %22 : vector<256x4xbf16> to vector<16x16x4xbf16>
    %cst_10 = arith.constant 0.000000e+00 : bf16
    %24 = vector.broadcast %cst_10 : bf16 to vector<16x1x4xbf16>
    %25 = vector.extract_strided_slice %23 {offsets = [0, 0, 0], sizes = [16, 15, 4], strides = [1, 1, 1]} : vector<16x16x4xbf16> to vector<16x15x4xbf16>
    %26 = tpu.concatenate %24, %25 in 1 : vector<16x1x4xbf16>, vector<16x15x4xbf16> -> vector<16x16x4xbf16>
    %27 = vector.extract_strided_slice %23 {offsets = [0, 1, 0], sizes = [16, 15, 4], strides = [1, 1, 1]} : vector<16x16x4xbf16> to vector<16x15x4xbf16>
    %28 = tpu.concatenate %27, %24 in 1 : vector<16x15x4xbf16>, vector<16x1x4xbf16> -> vector<16x16x4xbf16>
    %29 = tpu.concatenate %26, %23, %28 in 2 : vector<16x16x4xbf16>, vector<16x16x4xbf16>, vector<16x16x4xbf16> -> vector<16x16x12xbf16>
    %cst_11 = arith.constant 0.000000e+00 : bf16
    %30 = vector.broadcast %cst_11 : bf16 to vector<1x16x12xbf16>
    %31 = tpu.concatenate %30, %29, %30 in 0 : vector<1x16x12xbf16>, vector<16x16x12xbf16>, vector<1x16x12xbf16> -> vector<18x16x12xbf16>
    %32 = vector.extract_strided_slice %31 {offsets = [0, 0, 0], sizes = [16, 16, 12], strides = [1, 1, 1]} : vector<18x16x12xbf16> to vector<16x16x12xbf16>
    %33 = vector.extract_strided_slice %31 {offsets = [1, 0, 0], sizes = [16, 16, 12], strides = [1, 1, 1]} : vector<18x16x12xbf16> to vector<16x16x12xbf16>
    %34 = vector.extract_strided_slice %31 {offsets = [2, 0, 0], sizes = [16, 16, 12], strides = [1, 1, 1]} : vector<18x16x12xbf16> to vector<16x16x12xbf16>
    %35 = tpu.concatenate %32, %33, %34 in 2 : vector<16x16x12xbf16>, vector<16x16x12xbf16>, vector<16x16x12xbf16> -> vector<16x16x36xbf16>
    %36 = vector.shape_cast %35 : vector<16x16x36xbf16> to vector<256x36xbf16>
    %c0_12 = arith.constant 0 : index
    %c0_13 = arith.constant 0 : index
    %37 = vector.load %arg4[%c0_12, %c0_13] : memref<36x4xbf16, #tpu.memory_space<vmem>>, vector<36x4xbf16>
    %cst_14 = arith.constant dense<0.000000e+00> : vector<256x4xf32>
    %38 = tpu.matmul %36, %37, %cst_14 {dimension_numbers = #tpu.dot_dimension_numbers<[1], [0], [0], [1], [0, 0, 1, 1], [], []>} : vector<256x36xbf16>, vector<36x4xbf16>, vector<256x4xf32> -> vector<256x4xf32>
    %39 = arith.extf %1 : vector<16x16x4xbf16> to vector<16x16x4xf32>
    %40 = vector.shape_cast %39 : vector<16x16x4xf32> to vector<256x4xf32>
    %c0_15 = arith.constant 0 : index
    %c0_16 = arith.constant 0 : index
    %41 = vector.load %arg5[%c0_15, %c0_16] : memref<1x4xf32, #tpu.memory_space<vmem>>, vector<1x4xf32>
    %42 = vector.broadcast %41 : vector<1x4xf32> to vector<256x4xf32>
    %43 = arith.addf %38, %42 : vector<256x4xf32>
    %44 = arith.addf %43, %40 : vector<256x4xf32>
    %cst_17 = arith.constant 0.000000e+00 : f32
    %45 = vector.broadcast %cst_17 : f32 to vector<256x4xf32>
    %46 = arith.maximumf %44, %45 : vector<256x4xf32>
    %47 = arith.truncf %46 : vector<256x4xf32> to vector<256x4xbf16>
    %c0_18 = arith.constant 0 : index
    %c0_19 = arith.constant 0 : index
    %c0_20 = arith.constant 0 : index
    %48 = vector.load %arg6[%c0_18, %c0_19, %c0_20] : memref<1x256x4xbf16, #tpu.memory_space<vmem>>, vector<1x256x4xbf16>
    %49 = vector.shape_cast %48 : vector<1x256x4xbf16> to vector<256x4xbf16>
    %50 = vector.shape_cast %47 : vector<256x4xbf16> to vector<1x256x4xbf16>
    tpu.vector_store %arg6[%c0_18, %c0_19, %c0_20], %50 {strides = array<i32>} : memref<1x256x4xbf16, #tpu.memory_space<vmem>>, vector<1x256x4xbf16>,
    return
  }
  func.func @transform_0(%arg0: i32) -> (i32, i32, i32, i32) {
    %c0_i32 = arith.constant 0 : i32
    %c0_i32_0 = arith.constant 0 : i32
    %c0_i32_1 = arith.constant 0 : i32
    %c0_i32_2 = arith.constant 0 : i32
    return %arg0, %c0_i32, %c0_i32_0, %c0_i32_1 : i32, i32, i32, i32
  }
  func.func @transform_1(%arg0: i32) -> (i32, i32) {
    %c0_i32 = arith.constant 0 : i32
    %c0_i32_0 = arith.constant 0 : i32
    %c0_i32_1 = arith.constant 0 : i32
    return %c0_i32, %c0_i32_0 : i32, i32
  }
  func.func @transform_2(%arg0: i32) -> (i32, i32) {
    %c0_i32 = arith.constant 0 : i32
    %c0_i32_0 = arith.constant 0 : i32
    %c0_i32_1 = arith.constant 0 : i32
    return %c0_i32, %c0_i32_0 : i32, i32
  }
  func.func @transform_3(%arg0: i32) -> (i32, i32) {
    %c0_i32 = arith.constant 0 : i32
    %c0_i32_0 = arith.constant 0 : i32
    %c0_i32_1 = arith.constant 0 : i32
    return %c0_i32, %c0_i32_0 : i32, i32
  }
  func.func @transform_4(%arg0: i32) -> (i32, i32) {
    %c0_i32 = arith.constant 0 : i32
    %c0_i32_0 = arith.constant 0 : i32
    %c0_i32_1 = arith.constant 0 : i32
    return %c0_i32, %c0_i32_0 : i32, i32
  }
  func.func @transform_5(%arg0: i32) -> (i32, i32, i32) {
    %c0_i32 = arith.constant 0 : i32
    %c0_i32_0 = arith.constant 0 : i32
    %c0_i32_1 = arith.constant 0 : i32
    return %arg0, %c0_i32, %c0_i32_0 : i32, i32, i32
  }
}

</mosaic_0001>

<bundles_post_ra>
// kernel: tpu_custom_call.1
= control target key start
LH: loop header
LB: loop body
LE: loop exit
PB: predicated region body
PF: predicated region fallthrough
CT: control target
= control target key end

     0   :  { %s2554_s18 = smov 0   ;;  %s3531_s0 = inlined_call_operand.vmem [shape: bf16[2,16,16,4], index: 0, kind: input, shape index: {}]   ;;  %s3532_s1 = inlined_call_operand.vmem [shape: bf16[36,4], index: 1, kind: input, shape index: {}]   ;;  %s3533_s2 = inlined_call_operand.vmem [shape: f32[1,4], index: 2, kind: input, shape index: {}]   ;;  %s3534_s3 = inlined_call_operand.vmem [shape: bf16[36,4], index: 3, kind: input, shape index: {}]   ;;  %s3535_s4 = inlined_call_operand.vmem [shape: f32[1,4], index: 4, kind: input, shape index: {}]   ;;  %s3536_s5 = inlined_call_operand.vmem [shape: bf16[2,256,4], index: 5, kind: output, shape index: {}]  }
   0x1 LB: > { %s2195_s19 = sadd.s32 4294967295, %s2517_s18   ;;  %p2199_p0 = scmp.ge.s32.totalorder %s2517_s18, 1  ;;  %s2517_s18 = sphi %s2554_s18, %s15_s18  }
   0x2   : > { %p187_p1 = scmp.lt.s32.totalorder %s2517_s18, 3 }
   0x4   : > { %p188_p2 = pnand %p2199_p0, %p187_p1 }
   0x5   : > { %p215_p3 = scmp.lt.s32.totalorder (!%p188_p2), %s2195_s19, 1  ;;  %vm533_vm0 = vcmask (!%p188_p2), 1047552   ;;  %vm534_vm1 = vsmask.f32 (!%p188_p2), 7424  ;;  %s2519_s24 = smov (!%p188_p2), 4   ;;  %vm922_vm3 = vcmask (!%p188_p2), 1041408  }
   0x6   : > { %191 = sbr.rel (%p188_p2) target bundleno = 1009 (0x3f1), region = 40  ;;  %vm2606_vm2 = vmand (!%p188_p2), %vm533_vm0, %vm534_vm1  ;;  %s2520_s25 = smov (!%p188_p2), 8   ;;  %vm466_vm4 = vcmask (!%p188_p2), 1040384   ;;  %vm467_vm5 = vsmask.f32 (!%p188_p2), 256  ;;  %vm632_vm7 = vcmask (!%p188_p2), 31744  }
   0x7   : > { %vm2785_vm6 = vmand (!%p188_p2), %vm466_vm4, %vm467_vm5  ;;  %vm681_vm8 = vcmask (!%p188_p2), 64512   ;;  %s2521_s7 = smov (!%p188_p2), 12   ;;  %s2522_s8 = smov (!%p188_p2), 24   ;;  %vm795_vm9 = vcmask (!%p188_p2), 97280   ;;  %vm829_vm10 = vcmask (!%p188_p2), 195584   ;;  %vm889_vm11 = vcmask (!%p188_p2), 293888  }
   0x8   : > { %vm2107_vm12 = vcmask (!%p188_p2), 27648  }
   0xd   : > { %s3542_s19 = smov (!%p215_p3, %s2195_s19), 1 }
   0xe   : > { %s2294_s20 = sshll.u32 %s3542_s19, 7 }
   0xf   : > { %s2570_s23 = scalar_lea.vmem %s3531_s0, %s2294_s20 }
  0x10   : > { %v2573_v0 = vld [vmem:[%s2570_s23] sm:$0xff]   ;;  %v2576_v1 = vld [vmem:[%s2570_s23 + $0x10] sm:$0xff]   ;;  %v2579_v2 = vld [vmem:[%s2570_s23 + $0x8] sm:$0xff]  }
  0x11   : > { %v2582_v3 = vld [vmem:[%s2570_s23 + $0x18] sm:$0xff]   ;;  %v2585_v4 = vld [vmem:[%s2570_s23 + $0x20] sm:$0xff]   ;;  %552 = vrot.lane.b32.xlu0 %v2573_v0, %s2519_s24  ;;  %556 = vrot.lane.b32.xlu1 %v2576_v1, %s2519_s24  ;;  %v339_v5 = vshrl.u32 %v2573_v0, 16  ;;  %v342_v6 = vshll.u32 %v2573_v0, 16  ;;  %v346_v7 = vshrl.u32 %v2579_v2, 16  ;;  %v349_v8 = vshll.u32 %v2579_v2, 16 }
  0x12   : > { %v353_v9 = vshrl.u32 %v2576_v1, 16  ;;  %v356_v10 = vshll.u32 %v2576_v1, 16  ;;  %v363_v11 = vshll.u32 %v2582_v3, 16  ;;  %v2603_v14 = vld [vmem:[%s2570_s23 + $0x28] sm:$0xff]   ;;  %v370_v19 = vshll.u32 %v2585_v4, 16  ;;  %v2619_v23 = vld [vmem:[%s2570_s23 + $0x30] sm:$0xff]  }
  0x13   : > { %v485_v12 = vrot.slane %v342_v6, 1  ;;  %v487_v13 = vrot.slane %v349_v8, 1  ;;  %v360_v21 = vshrl.u32 %v2582_v3, 16  ;;  %v367_v27 = vshrl.u32 %v2585_v4, 16  ;;  %v2634_v31 = vld [vmem:[%s2570_s23 + $0x38] sm:$0xff]   ;;  %v2637_v32 = vld [vmem:[%s2570_s23 + $0x40] sm:$0xff]  }
  0x14   : > { %v489_v16 = vrot.slane %v356_v10, 1  ;;  %v491_v22 = vrot.slane %v363_v11, 1  ;;  %v493_v28 = vrot.slane %v370_v19, 1  ;;  %v377_v30 = vshll.u32 %v2603_v14, 16  ;;  %v2653_v41 = vld [vmem:[%s2570_s23 + $0x48] sm:$0xff]   ;;  %v2659_v49 = vld [vmem:[%s2570_s23 + $0x50] sm:$0xff]  }
  0x15   : > { %554 = vrot.lane.b32.xlu0 %v2579_v2, %s2519_s24  ;;  %v486_v17 = vor.u32 %v485_v12, %v339_v5  ;;  %v488_v18 = vor.u32 %v487_v13, %v346_v7  ;;  %v374_v34 = vshrl.u32 %v2603_v14, 16  ;;  %v384_v35 = vshll.u32 %v2619_v23, 16  ;;  %v2665_v54 = vld [vmem:[%s2570_s23 + $0x58] sm:$0xff]   ;;  %v2671_v59 = vld [vmem:[%s2570_s23 + $0x60] sm:$0xff]   ;;  %v252_v0 = vld [vmem:[%s2570_s23 + $0x68] sm:$0xff]  }
  0x16   : > { %v490_v20 = vor.u32 %v489_v16, %v353_v9  ;;  %v492_v29 = vor.u32 %v491_v22, %v360_v21  ;;  %v494_v33 = vor.u32 %v493_v28, %v367_v27  ;;  %v495_v37 = vrot.slane %v377_v30, 1 }
  0x17   : > { %v536_v24 = vsel %vm2606_vm2, %v486_v17, 0  ;;  %v537_v25 = vsel %vm2606_vm2, %v488_v18, 0  ;;  %v381_v39 = vshrl.u32 %v2619_v23, 16  ;;  %v497_v40 = vrot.slane %v384_v35, 1 }
  0x18   : > { %600 = vrot.lane.b32.xlu1 %v536_v24, %s2520_s25  ;;  %v538_v26 = vsel %vm2606_vm2, %v490_v20, 0  ;;  %v539_v36 = vsel %vm2606_vm2, %v492_v29, 0  ;;  %v540_v38 = vsel %vm2606_vm2, %v494_v33, 0  ;;  %v496_v42 = vor.u32 %v495_v37, %v374_v34 }
  0x19   : > { %602 = vrot.lane.b32.xlu0 %v537_v25, %s2520_s25  ;;  %v391_v43 = vshll.u32 %v2634_v31, 16  ;;  %v398_v44 = vshll.u32 %v2637_v32, 16  ;;  %v341_v45 = vrot.slane %v339_v5, 7  ;;  %v348_v46 = vrot.slane %v346_v7, 7 }
  0x1a   : > { %v355_v47 = vrot.slane %v353_v9, 7  ;;  %v362_v48 = vrot.slane %v360_v21, 7  ;;  %v369_v50 = vrot.slane %v367_v27, 7  ;;  %v376_v51 = vrot.slane %v374_v34, 7  ;;  %v254_v27 = vld [vmem:[%s2570_s23 + $0x70] sm:$0xff]  }
  0x1b   : > { %v498_v52 = vor.u32 %v497_v40, %v381_v39  ;;  %v388_v53 = vshrl.u32 %v2634_v31, 16  ;;  %v541_v55 = vsel %vm2606_vm2, %v496_v42, 0  ;;  %v499_v56 = vrot.slane %v391_v43, 1  ;;  %v256_v42 = vld [vmem:[%s2570_s23 + $0x78] sm:$0xff]  }
  0x1c   : > { %604 = vrot.lane.b32.xlu1 %v538_v26, %s2520_s25  ;;  %v395_v57 = vshrl.u32 %v2637_v32, 16  ;;  %v501_v58 = vrot.slane %v398_v44, 1  ;;  %v383_v60 = vrot.slane %v381_v39, 7  ;;  %v402_v62 = vshrl.u32 %v2653_v41, 16 }
  0x1d   : > { %558 = vrot.lane.b32.xlu0 %v2582_v3, %s2519_s24  ;;  %v390_v61 = vrot.slane %v388_v53, 7  ;;  %v405_v63 = vshll.u32 %v2653_v41, 16  ;;  %v2679_v5 = vor.u32 %v342_v6, %v341_v45  ;;  %v2683_v7 = vor.u32 %v356_v10, %v355_v47 }
  0x1e   : > { %v542_v9 = vsel %vm2606_vm2, %v498_v52, 0  ;;  %v397_v12 = vrot.slane %v395_v57, 7  ;;  %v409_v13 = vshrl.u32 %v2659_v49, 16  ;;  %v502_v16 = vor.u32 %v501_v58, %v395_v57 }
  0x1f   : > { %v404_v17 = vrot.slane %v402_v62, 7  ;;  %v416_v18 = vshrl.u32 %v2665_v54, 16  ;;  %v423_v1 = vshrl.u32 %v2671_v59, 16  ;;  %v2694_v10 = vor.u32 %v349_v8, %v348_v46 }
  0x20   : > { %560 = vrot.lane.b32.xlu1 %v2585_v4, %s2519_s24  ;;  %v411_v6 = vrot.slane %v409_v13, 7  ;;  %v2698_v20 = vor.u32 %v363_v11, %v362_v48  ;;  %v412_v21 = vshll.u32 %v2659_v49, 16  ;;  %v2706_v24 = vor.u32 %v377_v30, %v376_v51 }
  0x21   : > { %606 = vrot.lane.b32.xlu0 %v539_v36, %s2520_s25  ;;  %v418_v22 = vrot.slane %v416_v18, 7  ;;  %v425_v2 = vrot.slane %v423_v1, 7  ;;  %v2710_v8 = vor.u32 %v384_v35, %v383_v60  ;;  %v2712_v3 = vor.u32 %v391_v43, %v390_v61 }
  0x22   : > { %v503_v25 = vrot.slane %v405_v63, 1  ;;  %v419_v26 = vshll.u32 %v2665_v54, 16  ;;  %v2718_v4 = vor.u32 %v398_v44, %v397_v12  ;;  %v430_v28 = vshrl.u32 %v252_v0, 16  ;;  %v2473_v12 = vld [vmem:[%s3532_s1] sm:$0xff]  }
  0x23   : > { %v2721_v29 = vor.u32 %v405_v63, %v404_v17  ;;  %v2723_v30 = vor.u32 %v412_v21, %v411_v6  ;;  %v505_v34 = vrot.slane %v412_v21, 1  ;;  %v437_v39 = vshrl.u32 %v254_v27, 16  ;;  %2366 = vmatprep.subr.bf16.mxu0 %v2473_v12 }
  0x24   : > { %608 = vrot.lane.b32.xlu1 %v540_v38, %s2520_s25  ;;  %v2729_v33 = vor.u32 %v419_v26, %v418_v22  ;;  %v432_v35 = vrot.slane %v430_v28, 7  ;;  %v504_v37 = vor.u32 %v503_v25, %v402_v62  ;;  %v433_v38 = vshll.u32 %v252_v0, 16  ;;  %2367 = vmatpush3.bf16.msra.mxu0 %v2473_v12 }
  0x25   : > { %562 = vrot.lane.b32.xlu0 %v2603_v14, %s2519_s24  ;;  %v500_v14 = vor.u32 %v499_v56, %v388_v53  ;;  %v439_v40 = vrot.slane %v437_v39, 7  ;;  %v507_v45 = vrot.slane %v419_v26, 1  ;;  %v440_v46 = vshll.u32 %v254_v27, 16 }
  0x26   : > { %v2738_v43 = vor.u32 %v433_v38, %v432_v35  ;;  %v545_v44 = vsel %vm2606_vm2, %v504_v37, 0  ;;  %v444_v51 = vshrl.u32 %v256_v42, 16  ;;  %v447_v56 = vshll.u32 %v256_v42, 16 }
  0x27   : > { %v543_v11 = vsel %vm2606_vm2, %v500_v14, 0  ;;  %v513_v60 = vrot.slane %v440_v46, 1  ;;  %v470_v22 = vsel %vm2785_vm6, 0, %v2694_v10  ;;  %v471_v25 = vsel %vm2785_vm6, 0, %v2683_v7 }
  0x28   : > { %564 = vrot.lane.b32.xlu1 %v2619_v23, %s2519_s24  ;;  %v2704_v23 = vor.u32 %v370_v19, %v369_v50  ;;  %v426_v19 = vshll.u32 %v2671_v59, 16  ;;  %v508_v50 = vor.u32 %v507_v45, %v416_v18  ;;  %v446_v52 = vrot.slane %v444_v51, 7 }
  0x29   : > { %610 = vrot.lane.b32.xlu0 %v541_v55, %s2520_s25  ;;  %v511_v55 = vrot.slane %v433_v38, 1  ;;  %v515_v62 = vrot.slane %v447_v56, 1 }
  0x2a   : > { %v2732_v36 = vor.u32 %v426_v19, %v425_v2  ;;  %v509_v48 = vrot.slane %v426_v19, 1  ;;  %v2756_v57 = vor.u32 %v447_v56, %v446_v52  ;;  %v473_v38 = vsel %vm2785_vm6, 0, %v2704_v23 }
  0x2b   : > { %v512_v61 = vor.u32 %v511_v55, %v430_v28  ;;  %v474_v23 = vsel %vm2785_vm6, 0, %v2706_v24  ;;  %v477_v56 = vsel %vm2785_vm6, 0, %v2718_v4  ;;  %v478_v4 = vsel %vm2785_vm6, 0, %v2721_v29 }
  0x2c   : > { %612 = vrot.lane.b32.xlu1 %v542_v9, %s2520_s25  ;;  %v510_v53 = vor.u32 %v509_v48, %v423_v1  ;;  %v516_v9 = vor.u32 %v515_v62, %v444_v51  ;;  %v469_v1 = vsel %vm2785_vm6, 0, %v2679_v5 }
  0x2d   : > { %566 = vrot.lane.b32.xlu0 %v2634_v31, %s2519_s24  ;;  %v544_v31 = vsel %vm2606_vm2, %v502_v16, 0  ;;  %v549_v63 = vsel %vm2606_vm2, %v512_v61, 0  ;;  %v2475_v16 = vld [vmem:[%s3532_s1 + $0x10] ss:$0 sps:$4 sm:$0x33]  }
  0x2e   : > { %v548_v58 = vsel %vm2606_vm2, %v510_v53, 0  ;;  %v551_v14 = vsel %vm2606_vm2, %v516_v9, 0  ;;  %v924_v17 = vsel %vm922_vm3, %v2475_v16, 0  ;;  %v479_v9 = vsel %vm2785_vm6, 0, %v2723_v30 }
  0x2f   : > { %v480_v30 = vsel %vm2785_vm6, 0, %v2729_v33 }
  0x30   : > { %568 = vrot.lane.b32.xlu1 %v2637_v32, %s2519_s24  ;;  %v506_v32 = vor.u32 %v505_v34, %v409_v13  ;;  %v2474_v13 = vld [vmem:[%s3532_s1 + $0x8] sm:$0xff]   ;;  %v472_v34 = vsel %vm2785_vm6, 0, %v2698_v20 }
  0x31   : > { %614 = vrot.lane.b32.xlu0 %v543_v11, %s2520_s25  ;;  %2368 = vmatprep.subr.bf16.mxu0 %v2474_v13 }
  0x32   : > { %v546_v47 = vsel %vm2606_vm2, %v506_v32, 0  ;;  %2369 = vmatpush3.bf16.msra.mxu0 %v2474_v13 }
  0x33   : > { %2442 = vmatprep.subr.msk.bf16.mxu0 %vm922_vm3, %v2475_v16 }
  0x34   : > { %616 = vrot.lane.b32.xlu1 %v544_v31, %s2520_s25 }
  0x35   : > { %570 = vrot.lane.b32.xlu0 %v2653_v41, %s2519_s24  ;;  %v2747_v41 = vor.u32 %v440_v46, %v439_v40 }
  0x36   : > { %2371 = vmatpush3.bf16.msra.mxu0 %v924_v17 }
  0x38   : > { %572 = vrot.lane.b32.xlu1 %v2659_v49, %s2519_s24  ;;  %v547_v49 = vsel %vm2606_vm2, %v508_v50, 0 }
  0x39   : > { %618 = vrot.lane.b32.xlu0 %v545_v44, %s2520_s25 }
  0x3c   : > { %620 = vrot.lane.b32.xlu1 %v546_v47, %s2520_s25  ;;  %v475_v47 = vsel %vm2785_vm6, 0, %v2710_v8  ;;  %v476_v8 = vsel %vm2785_vm6, 0, %v2712_v3 }
  0x3d   : > { %574 = vrot.lane.b32.xlu0 %v2665_v54, %s2519_s24  ;;  %v514_v54 = vor.u32 %v513_v60, %v437_v39 }
  0x40   : > { %576 = vrot.lane.b32.xlu1 %v2671_v59, %s2519_s24  ;;  %v550_v59 = vsel %vm2606_vm2, %v514_v54, 0 }
  0x41   : > { %622 = vrot.lane.b32.xlu0 %v547_v49, %s2520_s25 }
  0x44   : > { %624 = vrot.lane.b32.xlu1 %v548_v58, %s2520_s25 }
  0x45   : > { %578 = vrot.lane.b32.xlu0 %v252_v0, %s2519_s24 }
  0x48   : > { %580 = vrot.lane.b32.xlu1 %v254_v27, %s2519_s24 }
  0x49   : > { %626 = vrot.lane.b32.xlu0 %v549_v63, %s2520_s25 }
  0x4c   : > { %628 = vrot.lane.b32.xlu1 %v550_v59, %s2520_s25 }
  0x4d   : > { %582 = vrot.lane.b32.xlu0 %v256_v42, %s2519_s24 }
  0x50   : > { %630 = vrot.lane.b32.xlu1 %v551_v14, %s2520_s25 }
  0x83   : > { %v553_v18 = vpop.permute.xlu0 %552  ;;  %v557_v6 = vpop.permute.xlu1 %556 }
  0x84   : > { %v635_v2 = vsel %vm632_vm7, %v469_v1, %v553_v18  ;;  %v641_v10 = vsel %vm632_vm7, %v471_v25, %v557_v6  ;;  %v481_v1 = vsel %vm2785_vm6, 0, %v2732_v36  ;;  %v482_v36 = vsel %vm2785_vm6, 0, %v2738_v43 }
  0x85   : > { %v484_v43 = vsel %vm2785_vm6, 0, %v2756_v57  ;;  %v2523_v57 = vmov 0  }
  0x87   : > { %v555_v21 = vpop.permute.xlu0 %554 }
  0x88   : > { %v638_v26 = vsel %vm632_vm7, %v470_v22, %v555_v21 }
  0x8a   : > { %v601_v11 = vpop.permute.xlu1 %600 }
  0x8b   : > { %v603_v27 = vpop.permute.xlu0 %602  ;;  %v2801_v19 = vsel %vm681_vm8, %v635_v2, %v601_v11 }
  0x8c   : > { %730 = vrot.lane.b32.xlu0 %v2801_v19, %s2521_s7  ;;  %v2806_v5 = vsel %vm681_vm8, %v638_v26, %v603_v27 }
  0x8d   : > { %732 = vrot.lane.b32.xlu1 %v2806_v5, %s2521_s7 }
  0x8e   : > { %v605_v28 = vpop.permute.xlu1 %604 }
  0x8f   : > { %v559_v7 = vpop.permute.xlu0 %558  ;;  %v2812_v31 = vsel %vm681_vm8, %v641_v10, %v605_v28  ;;  %v483_v10 = vsel %vm2785_vm6, 0, %v2747_v41 }
  0x90   : > { %763 = vrot.lane.b32.xlu0 %v2806_v5, %s2522_s8  ;;  %v644_v37 = vsel %vm632_vm7, %v472_v34, %v559_v7 }
  0x91   : > { %765 = vrot.lane.b32.xlu1 %v2812_v31, %s2522_s8 }
  0x92   : > { %v561_v35 = vpop.permute.xlu1 %560 }
  0x93   : > { %v607_v39 = vpop.permute.xlu0 %606  ;;  %v647_v32 = vsel %vm632_vm7, %v473_v38, %v561_v35 }
  0x94   : > { %734 = vrot.lane.b32.xlu0 %v2812_v31, %s2521_s7  ;;  %v2828_v20 = vsel %vm681_vm8, %v644_v37, %v607_v39 }
  0x95   : > { %736 = vrot.lane.b32.xlu1 %v2828_v20, %s2521_s7 }
  0x96   : > { %v609_v40 = vpop.permute.xlu1 %608 }
  0x97   : > { %v563_v42 = vpop.permute.xlu0 %562  ;;  %v2834_v44 = vsel %vm681_vm8, %v647_v32, %v609_v40 }
  0x98   : > { %767 = vrot.lane.b32.xlu0 %v2828_v20, %s2522_s8  ;;  %v650_v46 = vsel %vm632_vm7, %v474_v23, %v563_v42 }
  0x99   : > { %769 = vrot.lane.b32.xlu1 %v2834_v44, %s2522_s8 }
  0x9a   : > { %v565_v45 = vpop.permute.xlu1 %564 }
  0x9b   : > { %v611_v48 = vpop.permute.xlu0 %610  ;;  %v653_v24 = vsel %vm632_vm7, %v475_v47, %v565_v45 }
  0x9c   : > { %738 = vrot.lane.b32.xlu0 %v2834_v44, %s2521_s7  ;;  %v2850_v50 = vsel %vm681_vm8, %v650_v46, %v611_v48 }
  0x9d   : > { %740 = vrot.lane.b32.xlu1 %v2850_v50, %s2521_s7 }
  0x9e   : > { %v613_v51 = vpop.permute.xlu1 %612 }
  0x9f   : > { %v567_v52 = vpop.permute.xlu0 %566  ;;  %v2856_v53 = vsel %vm681_vm8, %v653_v24, %v613_v51 }
  0xa0   : > { %771 = vrot.lane.b32.xlu0 %v2850_v50, %s2522_s8  ;;  %v656_v55 = vsel %vm632_vm7, %v476_v8, %v567_v52 }
  0xa1   : > { %773 = vrot.lane.b32.xlu1 %v2856_v53, %s2522_s8 }
  0xa2   : > { %v569_v49 = vpop.permute.xlu1 %568 }
  0xa3   : > { %v615_v58 = vpop.permute.xlu0 %614  ;;  %v659_v3 = vsel %vm632_vm7, %v477_v56, %v569_v49 }
  0xa4   : > { %742 = vrot.lane.b32.xlu0 %v2856_v53, %s2521_s7  ;;  %v2872_v60 = vsel %vm681_vm8, %v656_v55, %v615_v58 }
  0xa5   : > { %744 = vrot.lane.b32.xlu1 %v2872_v60, %s2521_s7 }
  0xa6   : > { %v617_v61 = vpop.permute.xlu1 %616 }
  0xa7   : > { %v571_v54 = vpop.permute.xlu0 %570  ;;  %v2878_v62 = vsel %vm681_vm8, %v659_v3, %v617_v61 }
  0xa8   : > { %775 = vrot.lane.b32.xlu0 %v2872_v60, %s2522_s8  ;;  %v662_v59 = vsel %vm632_vm7, %v478_v4, %v571_v54 }
  0xa9   : > { %777 = vrot.lane.b32.xlu1 %v2878_v62, %s2522_s8 }
  0xaa   : > { %v573_v63 = vpop.permute.xlu1 %572 }
  0xab   : > { %v619_v12 = vpop.permute.xlu0 %618  ;;  %v665_v29 = vsel %vm632_vm7, %v479_v9, %v573_v63 }
  0xac   : > { %746 = vrot.lane.b32.xlu0 %v2878_v62, %s2521_s7  ;;  %v2894_v13 = vsel %vm681_vm8, %v662_v59, %v619_v12 }
  0xad   : > { %748 = vrot.lane.b32.xlu1 %v2894_v13, %s2521_s7 }
  0xae   : > { %v621_v14 = vpop.permute.xlu1 %620 }
  0xaf   : > { %v575_v16 = vpop.permute.xlu0 %574  ;;  %v2900_v17 = vsel %vm681_vm8, %v665_v29, %v621_v14 }
  0xb0   : > { %779 = vrot.lane.b32.xlu0 %v2894_v13, %s2522_s8  ;;  %v668_v6 = vsel %vm632_vm7, %v480_v30, %v575_v16 }
  0xb1   : > { %781 = vrot.lane.b32.xlu1 %v2900_v17, %s2522_s8 }
  0xb2   : > { %v577_v18 = vpop.permute.xlu1 %576 }
  0xb3   : > { %v623_v21 = vpop.permute.xlu0 %622  ;;  %v671_v33 = vsel %vm632_vm7, %v481_v1, %v577_v18 }
  0xb4   : > { %750 = vrot.lane.b32.xlu0 %v2900_v17, %s2521_s7  ;;  %v2916_v22 = vsel %vm681_vm8, %v668_v6, %v623_v21 }
  0xb5   : > { %752 = vrot.lane.b32.xlu1 %v2916_v22, %s2521_s7 }
  0xb6   : > { %v625_v2 = vpop.permute.xlu1 %624 }
  0xb7   : > { %v579_v11 = vpop.permute.xlu0 %578  ;;  %v2922_v25 = vsel %vm681_vm8, %v671_v33, %v625_v2 }
  0xb8   : > { %783 = vrot.lane.b32.xlu0 %v2916_v22, %s2522_s8  ;;  %v674_v27 = vsel %vm632_vm7, %v482_v36, %v579_v11 }
  0xb9   : > { %785 = vrot.lane.b32.xlu1 %v2922_v25, %s2522_s8 }
  0xba   : > { %v581_v26 = vpop.permute.xlu1 %580 }
  0xbb   : > { %v627_v28 = vpop.permute.xlu0 %626  ;;  %v677_v34 = vsel %vm632_vm7, %v483_v10, %v581_v26 }
  0xbc   : > { %754 = vrot.lane.b32.xlu0 %v2922_v25, %s2521_s7  ;;  %v2938_v7 = vsel %vm681_vm8, %v674_v27, %v627_v28 }
  0xbd   : > { %756 = vrot.lane.b32.xlu1 %v2938_v7, %s2521_s7 }
  0xbe   : > { %v629_v35 = vpop.permute.xlu1 %628 }
  0xbf   : > { %v2947_v37 = vsel %vm681_vm8, %v677_v34, %v629_v35  ;;  %v583_v41 = vpop.permute.xlu0 %582 }
  0xc0   : > { %787 = vrot.lane.b32.xlu0 %v2938_v7, %s2522_s8  ;;  %v680_v38 = vsel %vm632_vm7, %v484_v43, %v583_v41 }
  0xc1   : > { %789 = vrot.lane.b32.xlu1 %v2947_v37, %s2522_s8 }
  0xc2   : > { %v631_v39 = vpop.permute.xlu1 %630 }
  0xc3   : > { %v713_v32 = vsel %vm681_vm8, %v680_v38, %v631_v39 }
  0xc4   : > { %758 = vrot.lane.b32.xlu0 %v2947_v37, %s2521_s7 }
  0xc5   : > { %760 = vrot.lane.b32.xlu1 %v713_v32, %s2521_s7 }
  0xc8   : > { %791 = vrot.lane.b32.xlu0 %v713_v32, %s2522_s8 }
  0xc9   : > { %793 = vrot.lane.b32.xlu1 %v2523_v57, %s2522_s8 }
  0xfe   : > { %v731_v40 = vpop.permute.xlu0 %730 }
  0xff   : > { %v733_v42 = vpop.permute.xlu1 %732  ;;  %v798_v23 = vsel %vm795_vm9, 0, %v731_v40 }
 0x100   : > { %v800_v46 = vsel %vm795_vm9, %v2801_v19, %v733_v42 }
 0x102   : > { %v764_v45 = vpop.permute.xlu0 %763 }
 0x103   : > { %v766_v47 = vpop.permute.xlu1 %765  ;;  %v831_v48 = vsel %vm829_vm10, %v798_v23, %v764_v45 }
 0x104   : > { %v833_v24 = vsel %vm829_vm10, %v800_v46, %v766_v47  ;;  %2372 = vmatprep.mubr.msk.bf16.mxu0 %vm889_vm11, %v831_v48  ;;  %v3029_v46 = vld [vmem:[%s3533_s2] ss:$0 sm:$0xff] }
 0x105   : > { %2373 = vmatmul.mubr.msk.bf16.vlgmr.msra.gmra.mrb[0].mxu0 %vm889_vm11, %v833_v24 }
 0x106   : > { %v735_v51 = vpop.permute.xlu0 %734 }
 0x107   : > { %v737_v52 = vpop.permute.xlu1 %736  ;;  %v802_v8 = vsel %vm795_vm9, %v2806_v5, %v735_v51 }
 0x108   : > { %v804_v55 = vsel %vm795_vm9, %v2812_v31, %v737_v52 }
 0x10a   : > { %v768_v49 = vpop.permute.xlu0 %767 }
 0x10b   : > { %v835_v19 = vsel %vm829_vm10, %v802_v8, %v768_v49  ;;  %v770_v56 = vpop.permute.xlu1 %769 }
 0x10c   : > { %v837_v58 = vsel %vm829_vm10, %v804_v55, %v770_v56  ;;  %2376 = vmatprep.mubr.msk.bf16.mxu0 %vm889_vm11, %v835_v19 }
 0x10d   : > { %2377 = vmatmul.mubr.msk.bf16.gmra.mrb[4].mxu0 %vm889_vm11, %v837_v58 }
 0x10e   : > { %v739_v3 = vpop.permute.xlu0 %738 }
 0x10f   : > { %v741_v61 = vpop.permute.xlu1 %740  ;;  %v806_v54 = vsel %vm795_vm9, %v2828_v20, %v739_v3 }
 0x110   : > { %v808_v5 = vsel %vm795_vm9, %v2834_v44, %v741_v61 }
 0x112   : > { %v772_v4 = vpop.permute.xlu0 %771 }
 0x113   : > { %v839_v31 = vsel %vm829_vm10, %v806_v54, %v772_v4  ;;  %v774_v63 = vpop.permute.xlu1 %773 }
 0x114   : > { %v841_v59 = vsel %vm829_vm10, %v808_v5, %v774_v63  ;;  %2380 = vmatprep.mubr.msk.bf16.mxu0 %vm889_vm11, %v839_v31 }
 0x115   : > { %2381 = vmatmul.mubr.msk.bf16.gmra.mrb[8].mxu0 %vm889_vm11, %v841_v59 }
 0x116   : > { %v743_v9 = vpop.permute.xlu0 %742 }
 0x117   : > { %v745_v12 = vpop.permute.xlu1 %744  ;;  %v810_v29 = vsel %vm795_vm9, %v2850_v50, %v743_v9 }
 0x118   : > { %v812_v20 = vsel %vm795_vm9, %v2856_v53, %v745_v12 }
 0x11a   : > { %v776_v14 = vpop.permute.xlu0 %775 }
 0x11b   : > { %v843_v44 = vsel %vm829_vm10, %v810_v29, %v776_v14  ;;  %v778_v16 = vpop.permute.xlu1 %777 }
 0x11c   : > { %v845_v30 = vsel %vm829_vm10, %v812_v20, %v778_v16  ;;  %2384 = vmatprep.mubr.msk.bf16.mxu0 %vm889_vm11, %v843_v44 }
 0x11d   : > { %2385 = vmatmul.mubr.msk.bf16.gmra.mrb[12].mxu0 %vm889_vm11, %v845_v30 }
 0x11e   : > { %v747_v18 = vpop.permute.xlu0 %746 }
 0x11f   : > { %v749_v6 = vpop.permute.xlu1 %748  ;;  %v814_v1 = vsel %vm795_vm9, %v2872_v60, %v747_v18 }
 0x120   : > { %v816_v50 = vsel %vm795_vm9, %v2878_v62, %v749_v6 }
 0x122   : > { %v780_v21 = vpop.permute.xlu0 %779 }
 0x123   : > { %v847_v53 = vsel %vm829_vm10, %v814_v1, %v780_v21  ;;  %v782_v33 = vpop.permute.xlu1 %781 }
 0x124   : > { %v849_v2 = vsel %vm829_vm10, %v816_v50, %v782_v33  ;;  %2388 = vmatprep.mubr.msk.bf16.mxu0 %vm889_vm11, %v847_v53 }
 0x125   : > { %2389 = vmatmul.mubr.msk.bf16.gmra.mrb[16].mxu0 %vm889_vm11, %v849_v2 }
 0x126   : > { %v751_v11 = vpop.permute.xlu0 %750 }
 0x127   : > { %v753_v36 = vpop.permute.xlu1 %752  ;;  %v818_v26 = vsel %vm795_vm9, %v2894_v13, %v751_v11 }
 0x128   : > { %v820_v60 = vsel %vm795_vm9, %v2900_v17, %v753_v36 }
 0x12a   : > { %v784_v27 = vpop.permute.xlu0 %783 }
 0x12b   : > { %v851_v62 = vsel %vm829_vm10, %v818_v26, %v784_v27  ;;  %v786_v10 = vpop.permute.xlu1 %785 }
 0x12c   : > { %v853_v28 = vsel %vm829_vm10, %v820_v60, %v786_v10  ;;  %2392 = vmatprep.mubr.msk.bf16.mxu0 %vm889_vm11, %v851_v62 }
 0x12d   : > { %2393 = vmatmul.mubr.msk.bf16.gmra.mrb[20].mxu0 %vm889_vm11, %v853_v28 }
 0x12e   : > { %v755_v43 = vpop.permute.xlu0 %754 }
 0x12f   : > { %v757_v34 = vpop.permute.xlu1 %756  ;;  %v822_v35 = vsel %vm795_vm9, %v2916_v22, %v755_v43 }
 0x130   : > { %v824_v13 = vsel %vm795_vm9, %v2922_v25, %v757_v34 }
 0x132   : > { %v788_v41 = vpop.permute.xlu0 %787 }
 0x133   : > { %v855_v17 = vsel %vm829_vm10, %v822_v35, %v788_v41  ;;  %v790_v38 = vpop.permute.xlu1 %789 }
 0x134   : > { %v857_v39 = vsel %vm829_vm10, %v824_v13, %v790_v38  ;;  %2396 = vmatprep.mubr.msk.bf16.mxu0 %vm889_vm11, %v855_v17 }
 0x135   : > { %2397 = vmatmul.mubr.msk.bf16.gmra.mrb[24].mxu0 %vm889_vm11, %v857_v39 }
 0x136   : > { %v759_v32 = vpop.permute.xlu0 %758 }
 0x137   : > { %v761_v57 = vpop.permute.xlu1 %760  ;;  %v826_v40 = vsel %vm795_vm9, %v2938_v7, %v759_v32 }
 0x138   : > { %v828_v22 = vsel %vm795_vm9, %v2947_v37, %v761_v57 }
 0x13a   : > { %v792_v42 = vpop.permute.xlu0 %791 }
 0x13b   : > { %v859_v25 = vsel %vm829_vm10, %v826_v40, %v792_v42  ;;  %v3020_v23 = vpop.permute.xlu1 %793 }
 0x13c   : > { %v861_v45 = vsel %vm829_vm10, %v828_v22, %v3020_v23  ;;  %2400 = vmatprep.mubr.msk.bf16.mxu0 %vm889_vm11, %v859_v25 }
 0x13d   : > { %2401 = vmatmul.mubr.msk.bf16.gmra.mrb[28].mxu0 %vm889_vm11, %v861_v45 }
 0x1d8   : > { %v2374_v7 = vpop.f32.mrb[0].mxu0 }
 0x1d9   : > { %v969_v47 = vadd.f32 %v2374_v7, %v3029_v46  ;;  %v960_v37 = vpop.f32.mrb[1].mxu0 }
 0x1da   : > { %v961_v48 = vadd.f32 %v3029_v46, %v960_v37  ;;  %v2375_v24 = vpop.f32.mrb[2].mxu0 }
 0x1db   : > { %v972_v51 = vadd.f32 %v2375_v24, %v3029_v46  ;;  %v963_v52 = vpop.f32.mrb[3].mxu0  ;;  %v1089_v49 = vmax.f32 %v969_v47, 0.0 }
 0x1dc   : > { %v964_v8 = vadd.f32 %v3029_v46, %v963_v52  ;;  %v1087_v19 = vmax.f32 %v961_v48, 0.0 }
 0x1dd   : > { %v1090_v55 = vmax.f32 %v972_v51, 0.0 }
 0x1de   : > { %v1088_v56 = vmax.f32 %v964_v8, 0.0 }
 0x1df   : > { %v1120_v58 = vpack.c.bf16 %v1090_v55, %v1089_v49 }
 0x1e0   : > { %v1119_v3 = vpack.c.bf16 %v1088_v56, %v1087_v19  ;;  %v2378_v61 = vpop.f32.mrb[4].mxu0 }
 0x1e1   : > { %v1146_v54 = vshll.u32 %v1120_v58, 16  ;;  %v985_v4 = vadd.f32 %v2378_v61, %v3029_v46  ;;  %1361 = vrot.lane.b32.xlu1 %v1120_v58, %s2519_s24  ;;  %v976_v5 = vpop.f32.mrb[5].mxu0  ;;  %v1143_v31 = vshrl.u32 %v1120_v58, 16 }
 0x1e2   : > { %v1139_v63 = vshll.u32 %v1119_v3, 16  ;;  %v977_v59 = vadd.f32 %v3029_v46, %v976_v5  ;;  %v2379_v9 = vpop.f32.mrb[6].mxu0  ;;  %1359 = vrot.lane.b32.xlu0 %v1119_v3, %s2519_s24  ;;  %v1136_v12 = vshrl.u32 %v1119_v3, 16 }
 0x1e3   : > { %v988_v29 = vadd.f32 %v2379_v9, %v3029_v46  ;;  %v979_v14 = vpop.f32.mrb[7].mxu0  ;;  %v1145_v20 = vrot.slane %v1143_v31, 7  ;;  %v1281_v44 = vrot.slane %v1146_v54, 1  ;;  %v1093_v6 = vmax.f32 %v985_v4, 0.0 }
 0x1e4   : > { %v980_v16 = vadd.f32 %v3029_v46, %v979_v14  ;;  %v1279_v30 = vrot.slane %v1139_v63, 1  ;;  %v1138_v18 = vrot.slane %v1136_v12, 7  ;;  %v1091_v53 = vmax.f32 %v977_v59, 0.0 }
 0x1e5   : > { %v1094_v1 = vmax.f32 %v988_v29, 0.0  ;;  %v1282_v21 = vor.u32 %v1281_v44, %v1143_v31  ;;  %v3041_v50 = vor.u32 %v1146_v54, %v1145_v20 }
 0x1e6   : > { %v1092_v33 = vmax.f32 %v980_v16, 0.0  ;;  %v3043_v2 = vor.u32 %v1139_v63, %v1138_v18  ;;  %v1280_v26 = vor.u32 %v1279_v30, %v1136_v12 }
 0x1e7   : > { %v1122_v11 = vpack.c.bf16 %v1094_v1, %v1093_v6  ;;  %v1328_v36 = vsel %vm2606_vm2, %v1282_v21, 0 }
 0x1e8   : > { %v1121_v27 = vpack.c.bf16 %v1092_v33, %v1091_v53  ;;  %v2382_v60 = vpop.f32.mrb[8].mxu0  ;;  %1409 = vrot.lane.b32.xlu0 %v1328_v36, %s2520_s25  ;;  %v1327_v39 = vsel %vm2606_vm2, %v1280_v26, 0 }
 0x1e9   : > { %v1160_v62 = vshll.u32 %v1122_v11, 16  ;;  %v1001_v10 = vadd.f32 %v2382_v60, %v3029_v46  ;;  %v992_v28 = vpop.f32.mrb[9].mxu0  ;;  %v1157_v43 = vshrl.u32 %v1122_v11, 16 }
 0x1ea   : > { %v1153_v34 = vshll.u32 %v1121_v27, 16  ;;  %v993_v35 = vadd.f32 %v3029_v46, %v992_v28  ;;  %v2383_v41 = vpop.f32.mrb[10].mxu0  ;;  %1363 = vrot.lane.b32.xlu1 %v1121_v27, %s2519_s24  ;;  %v1150_v13 = vshrl.u32 %v1121_v27, 16 }
 0x1eb   : > { %v1004_v17 = vadd.f32 %v2383_v41, %v3029_v46  ;;  %v995_v38 = vpop.f32.mrb[11].mxu0  ;;  %v1159_v32 = vrot.slane %v1157_v43, 7  ;;  %v1285_v57 = vrot.slane %v1160_v62, 1  ;;  %v1097_v25 = vmax.f32 %v1001_v10, 0.0 }
 0x1ec   : > { %v996_v40 = vadd.f32 %v3029_v46, %v995_v38  ;;  %1407 = vrot.lane.b32.xlu0 %v1327_v39, %s2520_s25  ;;  %v1283_v42 = vrot.slane %v1153_v34, 1  ;;  %v1152_v22 = vrot.slane %v1150_v13, 7  ;;  %v1095_v47 = vmax.f32 %v993_v35, 0.0 }
 0x1ed   : > { %v1098_v45 = vmax.f32 %v1004_v17, 0.0  ;;  %v3056_v7 = vor.u32 %v1160_v62, %v1159_v32  ;;  %v1286_v52 = vor.u32 %v1285_v57, %v1157_v43 }
 0x1ee   : > { %v1096_v37 = vmax.f32 %v996_v40, 0.0  ;;  %v1284_v48 = vor.u32 %v1283_v42, %v1150_v13  ;;  %v3058_v24 = vor.u32 %v1153_v34, %v1152_v22 }
 0x1ef   : > { %v1124_v51 = vpack.c.bf16 %v1098_v45, %v1097_v25  ;;  %v1330_v59 = vsel %vm2606_vm2, %v1286_v52, 0 }
 0x1f0   : > { %v1123_v8 = vpack.c.bf16 %v1096_v37, %v1095_v47  ;;  %v2386_v49 = vpop.f32.mrb[12].mxu0  ;;  %1365 = vrot.lane.b32.xlu0 %v1122_v11, %s2519_s24  ;;  %v1329_v55 = vsel %vm2606_vm2, %v1284_v48, 0 }
 0x1f1   : > { %v1174_v19 = vshll.u32 %v1124_v51, 16  ;;  %v1017_v56 = vadd.f32 %v2386_v49, %v3029_v46  ;;  %v1008_v58 = vpop.f32.mrb[13].mxu0  ;;  %1411 = vrot.lane.b32.xlu1 %v1329_v55, %s2520_s25  ;;  %v1171_v3 = vshrl.u32 %v1124_v51, 16 }
 0x1f2   : > { %v1167_v61 = vshll.u32 %v1123_v8, 16  ;;  %v1009_v54 = vadd.f32 %v3029_v46, %v1008_v58  ;;  %v2387_v4 = vpop.f32.mrb[14].mxu0  ;;  %v1164_v5 = vshrl.u32 %v1123_v8, 16 }
 0x1f3   : > { %v1020_v31 = vadd.f32 %v2387_v4, %v3029_v46  ;;  %v1011_v63 = vpop.f32.mrb[15].mxu0  ;;  %v1173_v9 = vrot.slane %v1171_v3, 7  ;;  %v1289_v12 = vrot.slane %v1174_v19, 1  ;;  %v1101_v44 = vmax.f32 %v1017_v56, 0.0 }
 0x1f4   : > { %v1012_v29 = vadd.f32 %v3029_v46, %v1011_v63  ;;  %1413 = vrot.lane.b32.xlu0 %v1330_v59, %s2520_s25  ;;  %v1166_v14 = vrot.slane %v1164_v5, 7  ;;  %v1287_v20 = vrot.slane %v1167_v61, 1  ;;  %v1099_v18 = vmax.f32 %v1009_v54, 0.0 }
 0x1f5   : > { %v1102_v16 = vmax.f32 %v1020_v31, 0.0  ;;  %1367 = vrot.lane.b32.xlu1 %v1123_v8, %s2519_s24  ;;  %v3072_v30 = vor.u32 %v1174_v19, %v1173_v9  ;;  %v1290_v33 = vor.u32 %v1289_v12, %v1171_v3 }
 0x1f6   : > { %v1100_v6 = vmax.f32 %v1012_v29, 0.0  ;;  %v1288_v1 = vor.u32 %v1287_v20, %v1164_v5  ;;  %v3074_v21 = vor.u32 %v1167_v61, %v1166_v14 }
 0x1f7   : > { %v1126_v53 = vpack.c.bf16 %v1102_v16, %v1101_v44  ;;  %v1332_v17 = vsel %vm2606_vm2, %v1290_v33, 0 }
 0x1f8   : > { %v1125_v11 = vpack.c.bf16 %v1100_v6, %v1099_v18  ;;  %v2390_v36 = vpop.f32.mrb[16].mxu0  ;;  %1369 = vrot.lane.b32.xlu0 %v1124_v51, %s2519_s24  ;;  %v1331_v26 = vsel %vm2606_vm2, %v1288_v1, 0 }
 0x1f9   : > { %v1188_v27 = vshll.u32 %v1126_v53, 16  ;;  %v1033_v60 = vadd.f32 %v2390_v36, %v3029_v46  ;;  %v1024_v62 = vpop.f32.mrb[17].mxu0  ;;  %1415 = vrot.lane.b32.xlu1 %v1331_v26, %s2520_s25  ;;  %v1185_v10 = vshrl.u32 %v1126_v53, 16 }
 0x1fa   : > { %v1181_v28 = vshll.u32 %v1125_v11, 16  ;;  %v1025_v43 = vadd.f32 %v3029_v46, %v1024_v62  ;;  %v2391_v34 = vpop.f32.mrb[18].mxu0  ;;  %v1178_v35 = vshrl.u32 %v1125_v11, 16 }
 0x1fb   : > { %v1036_v41 = vadd.f32 %v2391_v34, %v3029_v46  ;;  %v1027_v13 = vpop.f32.mrb[19].mxu0  ;;  %v1187_v38 = vrot.slane %v1185_v10, 7  ;;  %v1293_v39 = vrot.slane %v1188_v27, 1  ;;  %v1105_v42 = vmax.f32 %v1033_v60, 0.0 }
 0x1fc   : > { %v1028_v32 = vadd.f32 %v3029_v46, %v1027_v13  ;;  %1417 = vrot.lane.b32.xlu0 %v1332_v17, %s2520_s25  ;;  %v1180_v57 = vrot.slane %v1178_v35, 7  ;;  %v1291_v40 = vrot.slane %v1181_v28, 1  ;;  %v1103_v45 = vmax.f32 %v1025_v43, 0.0 }
 0x1fd   : > { %v1106_v22 = vmax.f32 %v1036_v41, 0.0  ;;  %1371 = vrot.lane.b32.xlu1 %v1125_v11, %s2519_s24  ;;  %v3088_v25 = vor.u32 %v1188_v27, %v1187_v38  ;;  %v1294_v52 = vor.u32 %v1293_v39, %v1185_v10 }
 0x1fe   : > { %v1104_v47 = vmax.f32 %v1028_v32, 0.0  ;;  %v1292_v37 = vor.u32 %v1291_v40, %v1178_v35  ;;  %v3090_v48 = vor.u32 %v1181_v28, %v1180_v57 }
 0x1ff   : > { %v1128_v51 = vpack.c.bf16 %v1106_v22, %v1105_v42  ;;  %v1334_v59 = vsel %vm2606_vm2, %v1294_v52, 0 }
 0x200   : > { %v1127_v8 = vpack.c.bf16 %v1104_v47, %v1103_v45  ;;  %v2394_v49 = vpop.f32.mrb[20].mxu0  ;;  %1373 = vrot.lane.b32.xlu0 %v1126_v53, %s2519_s24  ;;  %v1333_v55 = vsel %vm2606_vm2, %v1292_v37, 0 }
 0x201   : > { %v1202_v19 = vshll.u32 %v1128_v51, 16  ;;  %v1049_v56 = vadd.f32 %v2394_v49, %v3029_v46  ;;  %v1040_v58 = vpop.f32.mrb[21].mxu0  ;;  %1419 = vrot.lane.b32.xlu1 %v1333_v55, %s2520_s25  ;;  %v1199_v3 = vshrl.u32 %v1128_v51, 16 }
 0x202   : > { %v1195_v61 = vshll.u32 %v1127_v8, 16  ;;  %v1041_v54 = vadd.f32 %v3029_v46, %v1040_v58  ;;  %v2395_v4 = vpop.f32.mrb[22].mxu0  ;;  %v1192_v5 = vshrl.u32 %v1127_v8, 16 }
 0x203   : > { %v1052_v31 = vadd.f32 %v2395_v4, %v3029_v46  ;;  %v1043_v63 = vpop.f32.mrb[23].mxu0  ;;  %v1201_v9 = vrot.slane %v1199_v3, 7  ;;  %v1297_v12 = vrot.slane %v1202_v19, 1  ;;  %v1109_v44 = vmax.f32 %v1049_v56, 0.0 }
 0x204   : > { %v1044_v29 = vadd.f32 %v3029_v46, %v1043_v63  ;;  %1421 = vrot.lane.b32.xlu0 %v1334_v59, %s2520_s25  ;;  %v1194_v14 = vrot.slane %v1192_v5, 7  ;;  %v1295_v20 = vrot.slane %v1195_v61, 1  ;;  %v1107_v6 = vmax.f32 %v1041_v54, 0.0 }
 0x205   : > { %v1110_v16 = vmax.f32 %v1052_v31, 0.0  ;;  %1375 = vrot.lane.b32.xlu1 %v1127_v8, %s2519_s24  ;;  %v3104_v18 = vor.u32 %v1202_v19, %v1201_v9  ;;  %v1298_v36 = vor.u32 %v1297_v12, %v1199_v3 }
 0x206   : > { %v1108_v1 = vmax.f32 %v1044_v29, 0.0  ;;  %v1296_v53 = vor.u32 %v1295_v20, %v1192_v5  ;;  %v3106_v33 = vor.u32 %v1195_v61, %v1194_v14 }
 0x207   : > { %v1130_v11 = vpack.c.bf16 %v1110_v16, %v1109_v44  ;;  %v1336_v39 = vsel %vm2606_vm2, %v1298_v36, 0 }
 0x208   : > { %v1129_v26 = vpack.c.bf16 %v1108_v1, %v1107_v6  ;;  %v2398_v27 = vpop.f32.mrb[24].mxu0  ;;  %1377 = vrot.lane.b32.xlu0 %v1128_v51, %s2519_s24  ;;  %v1335_v60 = vsel %vm2606_vm2, %v1296_v53, 0 }
 0x209   : > { %v1216_v62 = vshll.u32 %v1130_v11, 16  ;;  %v1065_v10 = vadd.f32 %v2398_v27, %v3029_v46  ;;  %v1056_v28 = vpop.f32.mrb[25].mxu0  ;;  %1423 = vrot.lane.b32.xlu1 %v1335_v60, %s2520_s25  ;;  %v1213_v43 = vshrl.u32 %v1130_v11, 16 }
 0x20a   : > { %v1209_v34 = vshll.u32 %v1129_v26, 16  ;;  %v1057_v35 = vadd.f32 %v3029_v46, %v1056_v28  ;;  %v2399_v41 = vpop.f32.mrb[26].mxu0  ;;  %v1206_v13 = vshrl.u32 %v1129_v26, 16 }
 0x20b   : > { %v1068_v17 = vadd.f32 %v2399_v41, %v3029_v46  ;;  %v1059_v38 = vpop.f32.mrb[27].mxu0  ;;  %v1215_v32 = vrot.slane %v1213_v43, 7  ;;  %v1301_v57 = vrot.slane %v1216_v62, 1  ;;  %v1113_v45 = vmax.f32 %v1065_v10, 0.0 }
 0x20c   : > { %v1060_v40 = vadd.f32 %v3029_v46, %v1059_v38  ;;  %1425 = vrot.lane.b32.xlu0 %v1336_v39, %s2520_s25  ;;  %v1208_v42 = vrot.slane %v1206_v13, 7  ;;  %v1299_v22 = vrot.slane %v1209_v34, 1  ;;  %v1111_v51 = vmax.f32 %v1057_v35, 0.0 }
 0x20d   : > { %v1114_v47 = vmax.f32 %v1068_v17, 0.0  ;;  %1379 = vrot.lane.b32.xlu1 %v1129_v26, %s2519_s24  ;;  %v3120_v37 = vor.u32 %v1216_v62, %v1215_v32  ;;  %v1302_v19 = vor.u32 %v1301_v57, %v1213_v43 }
 0x20e   : > { %v1112_v52 = vmax.f32 %v1060_v40, 0.0  ;;  %v1300_v8 = vor.u32 %v1299_v22, %v1206_v13  ;;  %v3122_v49 = vor.u32 %v1209_v34, %v1208_v42  ;;  %v2476_v40 = vld [vmem:[%s3534_s3] sm:$0xff]  }
 0x20f   : > { %v1132_v55 = vpack.c.bf16 %v1114_v47, %v1113_v45  ;;  %v1338_v14 = vsel %vm2606_vm2, %v1302_v19, 0  ;;  %2404 = vmatprep.subr.bf16.mxu1 %v2476_v40 }
 0x210   : > { %v1131_v56 = vpack.c.bf16 %v1112_v52, %v1111_v51  ;;  %v2402_v58 = vpop.f32.mrb[28].mxu0  ;;  %1381 = vrot.lane.b32.xlu0 %v1130_v11, %s2519_s24  ;;  %v1337_v3 = vsel %vm2606_vm2, %v1300_v8, 0  ;;  %2405 = vmatpush3.bf16.msra.mxu1 %v2476_v40  ;;  %v2477_v8 = vld [vmem:[%s3534_s3 + $0x8] sm:$0xff]   ;;  %v1272_v40 = vsel %vm2785_vm6, 0, %v3104_v18  ;;  %v1273_v18 = vsel %vm2785_vm6, 0, %v3122_v49 }
 0x211   : > { %v1230_v61 = vshll.u32 %v1132_v55, 16  ;;  %v1081_v54 = vadd.f32 %v2402_v58, %v3029_v46  ;;  %v1072_v4 = vpop.f32.mrb[29].mxu0  ;;  %1427 = vrot.lane.b32.xlu1 %v1337_v3, %s2520_s25  ;;  %v1227_v5 = vshrl.u32 %v1132_v55, 16  ;;  %2406 = vmatprep.subr.bf16.mxu1 %v2477_v8  ;;  %v1264_v58 = vsel %vm2785_vm6, 0, %v3041_v50 }
 0x212   : > { %v1223_v31 = vshll.u32 %v1131_v56, 16  ;;  %v1073_v63 = vadd.f32 %v3029_v46, %v1072_v4  ;;  %v2403_v59 = vpop.f32.mrb[30].mxu0  ;;  %v1220_v9 = vshrl.u32 %v1131_v56, 16  ;;  %v1263_v4 = vsel %vm2785_vm6, 0, %v3043_v2 }
 0x213   : > { %v1084_v12 = vadd.f32 %v2403_v59, %v3029_v46  ;;  %v1075_v29 = vpop.f32.mrb[31].mxu0  ;;  %v1229_v20 = vrot.slane %v1227_v5, 7  ;;  %v1305_v44 = vrot.slane %v1230_v61, 1  ;;  %v1117_v53 = vmax.f32 %v1081_v54, 0.0 }
 0x214   : > { %v1076_v16 = vadd.f32 %v3029_v46, %v1075_v29  ;;  %1429 = vrot.lane.b32.xlu0 %v1338_v14, %s2520_s25  ;;  %v1222_v6 = vrot.slane %v1220_v9, 7  ;;  %v1303_v1 = vrot.slane %v1223_v31, 1  ;;  %v1115_v26 = vmax.f32 %v1073_v63, 0.0  ;;  %2407 = vmatpush3.bf16.msra.mxu1 %v2477_v8 }
 0x215   : > { %v1118_v11 = vmax.f32 %v1084_v12, 0.0  ;;  %1383 = vrot.lane.b32.xlu1 %v1131_v56, %s2519_s24  ;;  %v3136_v36 = vor.u32 %v1230_v61, %v1229_v20  ;;  %v1306_v28 = vor.u32 %v1305_v44, %v1227_v5  ;;  %v1265_v50 = vsel %vm2785_vm6, 0, %v3058_v24 }
 0x216   : > { %v1116_v27 = vmax.f32 %v1076_v16, 0.0  ;;  %v1304_v60 = vor.u32 %v1303_v1, %v1220_v9  ;;  %v3138_v62 = vor.u32 %v1223_v31, %v1222_v6  ;;  %v1266_v14 = vsel %vm2785_vm6, 0, %v3056_v7 }
 0x217   : > { %v1134_v10 = vpack.c.bf16 %v1118_v11, %v1117_v53  ;;  %v1340_v17 = vsel %vm2606_vm2, %v1306_v28, 0  ;;  %v1267_v7 = vsel %vm2785_vm6, 0, %v3074_v21 }
 0x218   : > { %v1133_v43 = vpack.c.bf16 %v1116_v27, %v1115_v26  ;;  %1385 = vrot.lane.b32.xlu0 %v1132_v55, %s2519_s24  ;;  %v1339_v46 = vsel %vm2606_vm2, %v1304_v60, 0  ;;  %v2478_v55 = vld [vmem:[%s3534_s3 + $0x10] ss:$0 sps:$4 sm:$0x33]   ;;  %v1268_v26 = vsel %vm2785_vm6, 0, %v3072_v30  ;;  %v1269_v30 = vsel %vm2785_vm6, 0, %v3090_v48 }
 0x219   : > { %v1244_v34 = vshll.u32 %v1134_v10, 16  ;;  %1431 = vrot.lane.b32.xlu1 %v1339_v46, %s2520_s25  ;;  %v1241_v35 = vshrl.u32 %v1134_v10, 16  ;;  %2443 = vmatprep.subr.msk.bf16.mxu1 %vm922_vm3, %v2478_v55  ;;  %v1752_v19 = vsel %vm922_vm3, %v2478_v55, 0 }
 0x21a   : > { %v1237_v41 = vshll.u32 %v1133_v43, 16  ;;  %v1234_v13 = vshrl.u32 %v1133_v43, 16  ;;  %2409 = vmatpush3.bf16.msra.mxu1 %v1752_v19 }
 0x21b   : > { %v1243_v38 = vrot.slane %v1241_v35, 7  ;;  %v1309_v57 = vrot.slane %v1244_v34, 1 }
 0x21c   : > { %1433 = vrot.lane.b32.xlu0 %v1340_v17, %s2520_s25  ;;  %v1236_v39 = vrot.slane %v1234_v13, 7  ;;  %v1307_v32 = vrot.slane %v1237_v41, 1 }
 0x21d   : > { %1387 = vrot.lane.b32.xlu1 %v1133_v43, %s2519_s24  ;;  %v3151_v42 = vor.u32 %v1244_v34, %v1243_v38  ;;  %v1310_v51 = vor.u32 %v1309_v57, %v1241_v35  ;;  %v1270_v35 = vsel %vm2785_vm6, 0, %v3088_v25  ;;  %v1271_v25 = vsel %vm2785_vm6, 0, %v3106_v33 }
 0x21e   : > { %v1308_v22 = vor.u32 %v1307_v32, %v1234_v13  ;;  %v3153_v45 = vor.u32 %v1237_v41, %v1236_v39 }
 0x21f   : > { %v1342_v52 = vsel %vm2606_vm2, %v1310_v51, 0 }
 0x220   : > { %1389 = vrot.lane.b32.xlu0 %v1134_v10, %s2519_s24  ;;  %v1341_v47 = vsel %vm2606_vm2, %v1308_v22, 0 }
 0x221   : > { %1435 = vrot.lane.b32.xlu1 %v1341_v47, %s2520_s25 }
 0x225   : > { %1437 = vrot.lane.b32.xlu1 %v1342_v52, %s2520_s25  ;;  %s3420_s25 = scalar_lea.vmem %s3536_s5, %s2294_s20 }
 0x253   : > { %v1362_v15 = vpop.permute.xlu1 %1361 }
 0x254   : > { %v1360_v56 = vpop.permute.xlu0 %1359  ;;  %v1444_v3 = vsel %vm632_vm7, %v1264_v58, %v1362_v15 }
 0x255   : > { %v1441_v5 = vsel %vm632_vm7, %v1263_v4, %v1360_v56  ;;  %v1274_v56 = vsel %vm2785_vm6, 0, %v3120_v37  ;;  %v1275_v37 = vsel %vm2785_vm6, 0, %v3138_v62 }
 0x25a   : > { %v1410_v61 = vpop.permute.xlu0 %1409 }
 0x25b   : > { %v3175_v54 = vsel %vm681_vm8, %v1444_v3, %v1410_v61 }
 0x25c   : > { %1537 = vrot.lane.b32.xlu1 %v3175_v54, %s2521_s7  ;;  %v1364_v63 = vpop.permute.xlu1 %1363 }
 0x25d   : > { %v1447_v12 = vsel %vm632_vm7, %v1265_v50, %v1364_v63  ;;  %v1276_v63 = vsel %vm2785_vm6, 0, %v3136_v36  ;;  %v1277_v36 = vsel %vm2785_vm6, 0, %v3153_v45 }
 0x25e   : > { %v1408_v31 = vpop.permute.xlu0 %1407 }
 0x25f   : > { %v3184_v59 = vsel %vm681_vm8, %v1441_v5, %v1408_v31 }
 0x260   : > { %1535 = vrot.lane.b32.xlu0 %v3184_v59, %s2521_s7 }
 0x262   : > { %v1366_v9 = vpop.permute.xlu0 %1365 }
 0x263   : > { %v1412_v29 = vpop.permute.xlu1 %1411  ;;  %v1450_v20 = vsel %vm632_vm7, %v1266_v14, %v1366_v9 }
 0x264   : > { %v3193_v2 = vsel %vm681_vm8, %v1447_v12, %v1412_v29  ;;  %1567 = vrot.lane.b32.xlu0 %v3175_v54, %s2522_s8 }
 0x265   : > { %1569 = vrot.lane.b32.xlu1 %v3193_v2, %s2522_s8 }
 0x266   : > { %v1414_v24 = vpop.permute.xlu0 %1413 }
 0x267   : > { %v3204_v44 = vsel %vm681_vm8, %v1450_v20, %v1414_v24  ;;  %v1368_v16 = vpop.permute.xlu1 %1367 }
 0x268   : > { %1539 = vrot.lane.b32.xlu0 %v3193_v2, %s2521_s7  ;;  %v1453_v1 = vsel %vm632_vm7, %v1267_v7, %v1368_v16  ;;  %v1278_v16 = vsel %vm2785_vm6, 0, %v3151_v42 }
 0x269   : > { %1541 = vrot.lane.b32.xlu1 %v3204_v44, %s2521_s7 }
 0x26a   : > { %v1370_v6 = vpop.permute.xlu0 %1369 }
 0x26b   : > { %v1416_v53 = vpop.permute.xlu1 %1415  ;;  %v1456_v27 = vsel %vm632_vm7, %v1268_v26, %v1370_v6 }
 0x26c   : > { %v3215_v11 = vsel %vm681_vm8, %v1453_v1, %v1416_v53  ;;  %1571 = vrot.lane.b32.xlu0 %v3204_v44, %s2522_s8 }
 0x26d   : > { %1573 = vrot.lane.b32.xlu1 %v3215_v11, %s2522_s8 }
 0x26e   : > { %v1418_v21 = vpop.permute.xlu0 %1417 }
 0x26f   : > { %v3226_v60 = vsel %vm681_vm8, %v1456_v27, %v1418_v21  ;;  %v1372_v10 = vpop.permute.xlu1 %1371 }
 0x270   : > { %1543 = vrot.lane.b32.xlu0 %v3215_v11, %s2521_s7  ;;  %v1459_v43 = vsel %vm632_vm7, %v1269_v30, %v1372_v10 }
 0x271   : > { %1545 = vrot.lane.b32.xlu1 %v3226_v60, %s2521_s7 }
 0x272   : > { %v1374_v28 = vpop.permute.xlu0 %1373 }
 0x273   : > { %v1420_v46 = vpop.permute.xlu1 %1419  ;;  %v1462_v41 = vsel %vm632_vm7, %v1270_v35, %v1374_v28 }
 0x274   : > { %v3237_v34 = vsel %vm681_vm8, %v1459_v43, %v1420_v46  ;;  %1575 = vrot.lane.b32.xlu0 %v3226_v60, %s2522_s8 }
 0x275   : > { %1577 = vrot.lane.b32.xlu1 %v3237_v34, %s2522_s8 }
 0x276   : > { %v1422_v48 = vpop.permute.xlu0 %1421 }
 0x277   : > { %v3248_v13 = vsel %vm681_vm8, %v1462_v41, %v1422_v48  ;;  %v1376_v17 = vpop.permute.xlu1 %1375 }
 0x278   : > { %1547 = vrot.lane.b32.xlu0 %v3237_v34, %s2521_s7  ;;  %v1465_v39 = vsel %vm632_vm7, %v1271_v25, %v1376_v17 }
 0x279   : > { %1549 = vrot.lane.b32.xlu1 %v3248_v13, %s2521_s7 }
 0x27a   : > { %v1378_v38 = vpop.permute.xlu0 %1377 }
 0x27b   : > { %v1424_v32 = vpop.permute.xlu1 %1423  ;;  %v1468_v22 = vsel %vm632_vm7, %v1272_v40, %v1378_v38 }
 0x27c   : > { %v3259_v57 = vsel %vm681_vm8, %v1465_v39, %v1424_v32  ;;  %1579 = vrot.lane.b32.xlu0 %v3248_v13, %s2522_s8 }
 0x27d   : > { %1581 = vrot.lane.b32.xlu1 %v3259_v57, %s2522_s8 }
 0x27e   : > { %v1426_v33 = vpop.permute.xlu0 %1425 }
 0x27f   : > { %v3270_v47 = vsel %vm681_vm8, %v1468_v22, %v1426_v33  ;;  %v1380_v51 = vpop.permute.xlu1 %1379 }
 0x280   : > { %1551 = vrot.lane.b32.xlu0 %v3259_v57, %s2521_s7  ;;  %v1471_v8 = vsel %vm632_vm7, %v1273_v18, %v1380_v51 }
 0x281   : > { %1553 = vrot.lane.b32.xlu1 %v3270_v47, %s2521_s7 }
 0x282   : > { %v1382_v52 = vpop.permute.xlu0 %1381 }
 0x283   : > { %v1428_v55 = vpop.permute.xlu1 %1427  ;;  %v1474_v15 = vsel %vm632_vm7, %v1274_v56, %v1382_v52 }
 0x284   : > { %v3281_v19 = vsel %vm681_vm8, %v1471_v8, %v1428_v55  ;;  %1583 = vrot.lane.b32.xlu0 %v3270_v47, %s2522_s8 }
 0x285   : > { %1585 = vrot.lane.b32.xlu1 %v3281_v19, %s2522_s8 }
 0x286   : > { %v1430_v49 = vpop.permute.xlu0 %1429 }
 0x287   : > { %v3292_v58 = vsel %vm681_vm8, %v1474_v15, %v1430_v49  ;;  %v1384_v3 = vpop.permute.xlu1 %1383 }
 0x288   : > { %1555 = vrot.lane.b32.xlu0 %v3281_v19, %s2521_s7  ;;  %v1477_v4 = vsel %vm632_vm7, %v1275_v37, %v1384_v3 }
 0x289   : > { %1557 = vrot.lane.b32.xlu1 %v3292_v58, %s2521_s7 }
 0x28a   : > { %v1386_v61 = vpop.permute.xlu0 %1385 }
 0x28b   : > { %v1432_v5 = vpop.permute.xlu1 %1431  ;;  %v1480_v50 = vsel %vm632_vm7, %v1276_v63, %v1386_v61 }
 0x28c   : > { %v3303_v31 = vsel %vm681_vm8, %v1477_v4, %v1432_v5  ;;  %1587 = vrot.lane.b32.xlu0 %v3292_v58, %s2522_s8 }
 0x28d   : > { %1589 = vrot.lane.b32.xlu1 %v3303_v31, %s2522_s8 }
 0x28e   : > { %v1434_v62 = vpop.permute.xlu0 %1433 }
 0x28f   : > { %v3314_v9 = vsel %vm681_vm8, %v1480_v50, %v1434_v62  ;;  %v1388_v12 = vpop.permute.xlu1 %1387 }
 0x290   : > { %1559 = vrot.lane.b32.xlu0 %v3303_v31, %s2521_s7  ;;  %v1483_v29 = vsel %vm632_vm7, %v1277_v36, %v1388_v12 }
 0x291   : > { %1561 = vrot.lane.b32.xlu1 %v3314_v9, %s2521_s7 }
 0x292   : > { %v1390_v20 = vpop.permute.xlu0 %1389 }
 0x293   : > { %v1436_v14 = vpop.permute.xlu1 %1435  ;;  %v1486_v7 = vsel %vm632_vm7, %v1278_v16, %v1390_v20 }
 0x294   : > { %v3325_v24 = vsel %vm681_vm8, %v1483_v29, %v1436_v14  ;;  %1591 = vrot.lane.b32.xlu0 %v3314_v9, %s2522_s8 }
 0x295   : > { %1593 = vrot.lane.b32.xlu1 %v3325_v24, %s2522_s8 }
 0x297   : > { %v1438_v45 = vpop.permute.xlu1 %1437 }
 0x298   : > { %v1518_v6 = vsel %vm681_vm8, %v1486_v7, %v1438_v45  ;;  %1563 = vrot.lane.b32.xlu0 %v3325_v24, %s2521_s7 }
 0x299   : > { %1565 = vrot.lane.b32.xlu1 %v1518_v6, %s2521_s7 }
 0x29c   : > { %1595 = vrot.lane.b32.xlu0 %v1518_v6, %s2522_s8 }
 0x2ce   : > { %v1538_v53 = vpop.permute.xlu1 %1537 }
 0x2cf   : > { %v1600_v0 = vsel %vm795_vm9, %v3184_v59, %v1538_v53 }
 0x2d2   : > { %v1536_v1 = vpop.permute.xlu0 %1535 }
 0x2d3   : > { %v1598_v26 = vsel %vm795_vm9, 0, %v1536_v1 }
 0x2d6   : > { %v1568_v27 = vpop.permute.xlu0 %1567 }
 0x2d7   : > { %v1570_v42 = vpop.permute.xlu1 %1569  ;;  %v1630_v21 = vsel %vm829_vm10, %v1598_v26, %v1568_v27  ;;  %v3407_v26 = vld [vmem:[%s3535_s4] ss:$0 sm:$0xff]  ;;  %v2495_v27 = vld [vmem:[%s2570_s23 + $0x8] sm:$0xff]  }
 0x2d8   : > { %v1632_v10 = vsel %vm829_vm10, %v1600_v0, %v1570_v42  ;;  %2410 = vmatprep.mubr.msk.bf16.mxu1 %vm889_vm11, %v1630_v21 }
 0x2d9   : > { %2411 = vmatmul.mubr.msk.bf16.vlgmr.msra.gmra.mrb[0].mxu1 %vm889_vm11, %v1632_v10 }
 0x2da   : > { %v1540_v30 = vpop.permute.xlu0 %1539 }
 0x2db   : > { %v1542_v28 = vpop.permute.xlu1 %1541  ;;  %v1602_v43 = vsel %vm795_vm9, %v3175_v54, %v1540_v30  ;;  %v1668_v30 = vunpack.c.h.bf16 %v2495_v27 }
 0x2dc   : > { %v1604_v35 = vsel %vm795_vm9, %v3193_v2, %v1542_v28 }
 0x2de   : > { %v1572_v46 = vpop.permute.xlu0 %1571 }
 0x2df   : > { %v1634_v59 = vsel %vm829_vm10, %v1602_v43, %v1572_v46  ;;  %v1574_v41 = vpop.permute.xlu1 %1573 }
 0x2e0   : > { %v1636_v48 = vsel %vm829_vm10, %v1604_v35, %v1574_v41  ;;  %2414 = vmatprep.mubr.msk.bf16.mxu1 %vm889_vm11, %v1634_v59 }
 0x2e1   : > { %2415 = vmatmul.mubr.msk.bf16.gmra.mrb[4].mxu1 %vm889_vm11, %v1636_v48 }
 0x2e2   : > { %v1544_v17 = vpop.permute.xlu0 %1543 }
 0x2e3   : > { %v1546_v25 = vpop.permute.xlu1 %1545  ;;  %v1606_v38 = vsel %vm795_vm9, %v3204_v44, %v1544_v17 }
 0x2e4   : > { %v1608_v54 = vsel %vm795_vm9, %v3215_v11, %v1546_v25 }
 0x2e6   : > { %v1576_v39 = vpop.permute.xlu0 %1575 }
 0x2e7   : > { %v1638_v2 = vsel %vm829_vm10, %v1606_v38, %v1576_v39  ;;  %v1578_v32 = vpop.permute.xlu1 %1577 }
 0x2e8   : > { %v1640_v40 = vsel %vm829_vm10, %v1608_v54, %v1578_v32  ;;  %2418 = vmatprep.mubr.msk.bf16.mxu1 %vm889_vm11, %v1638_v2  ;;  %v2497_v32 = vld [vmem:[%s2570_s23 + $0x18] sm:$0xff]  }
 0x2e9   : > { %2419 = vmatmul.mubr.msk.bf16.gmra.mrb[8].mxu1 %vm889_vm11, %v1640_v40  ;;  %v1671_v40 = vunpack.c.l.bf16 %v2497_v32 }
 0x2ea   : > { %v1548_v22 = vpop.permute.xlu0 %1547 }
 0x2eb   : > { %v1550_v33 = vpop.permute.xlu1 %1549  ;;  %v1610_v51 = vsel %vm795_vm9, %v3226_v60, %v1548_v22 }
 0x2ec   : > { %v1612_v44 = vsel %vm795_vm9, %v3237_v34, %v1550_v33 }
 0x2ee   : > { %v1580_v18 = vpop.permute.xlu0 %1579 }
 0x2ef   : > { %v1642_v11 = vsel %vm829_vm10, %v1610_v51, %v1580_v18  ;;  %v1582_v52 = vpop.permute.xlu1 %1581  ;;  %v2498_v18 = vld [vmem:[%s2570_s23 + $0x10] sm:$0xff]  }
 0x2f0   : > { %v1644_v8 = vsel %vm829_vm10, %v1612_v44, %v1582_v52  ;;  %2422 = vmatprep.mubr.msk.bf16.mxu1 %vm889_vm11, %v1642_v11  ;;  %v1669_v44 = vunpack.c.l.bf16 %v2498_v18 }
 0x2f1   : > { %2423 = vmatmul.mubr.msk.bf16.gmra.mrb[12].mxu1 %vm889_vm11, %v1644_v8 }
 0x2f2   : > { %v1552_v55 = vpop.permute.xlu0 %1551 }
 0x2f3   : > { %v1554_v56 = vpop.permute.xlu1 %1553  ;;  %v1614_v15 = vsel %vm795_vm9, %v3248_v13, %v1552_v55  ;;  %v1672_v55 = vunpack.c.h.bf16 %v2497_v32 }
 0x2f4   : > { %v1616_v60 = vsel %vm795_vm9, %v3259_v57, %v1554_v56 }
 0x2f6   : > { %v1584_v49 = vpop.permute.xlu0 %1583 }
 0x2f7   : > { %v1646_v34 = vsel %vm829_vm10, %v1614_v15, %v1584_v49  ;;  %v1586_v3 = vpop.permute.xlu1 %1585 }
 0x2f8   : > { %v1648_v37 = vsel %vm829_vm10, %v1616_v60, %v1586_v3  ;;  %2426 = vmatprep.mubr.msk.bf16.mxu1 %vm889_vm11, %v1646_v34  ;;  %v1670_v60 = vunpack.c.h.bf16 %v2498_v18 }
 0x2f9   : > { %2427 = vmatmul.mubr.msk.bf16.gmra.mrb[16].mxu1 %vm889_vm11, %v1648_v37 }
 0x2fa   : > { %v1556_v61 = vpop.permute.xlu0 %1555 }
 0x2fb   : > { %v1558_v4 = vpop.permute.xlu1 %1557  ;;  %v1618_v5 = vsel %vm795_vm9, %v3270_v47, %v1556_v61 }
 0x2fc   : > { %v1620_v13 = vsel %vm795_vm9, %v3281_v19, %v1558_v4 }
 0x2fe   : > { %v1588_v63 = vpop.permute.xlu0 %1587 }
 0x2ff   : > { %v1650_v57 = vsel %vm829_vm10, %v1618_v5, %v1588_v63  ;;  %v1590_v50 = vpop.permute.xlu1 %1589 }
 0x300   : > { %v1652_v62 = vsel %vm829_vm10, %v1620_v13, %v1590_v50  ;;  %2430 = vmatprep.mubr.msk.bf16.mxu1 %vm889_vm11, %v1650_v57 }
 0x301   : > { %2431 = vmatmul.mubr.msk.bf16.gmra.mrb[20].mxu1 %vm889_vm11, %v1652_v62 }
 0x302   : > { %v1560_v12 = vpop.permute.xlu0 %1559 }
 0x303   : > { %v1562_v36 = vpop.permute.xlu1 %1561  ;;  %v1622_v29 = vsel %vm795_vm9, %v3292_v58, %v1560_v12  ;;  %v2499_v12 = vld [vmem:[%s2570_s23 + $0x28] sm:$0xff]  }
 0x304   : > { %v1624_v47 = vsel %vm795_vm9, %v3303_v31, %v1562_v36  ;;  %v1675_v36 = vunpack.c.l.bf16 %v2499_v12 }
 0x306   : > { %v1592_v14 = vpop.permute.xlu0 %1591 }
 0x307   : > { %v1654_v19 = vsel %vm829_vm10, %v1622_v29, %v1592_v14  ;;  %v1594_v20 = vpop.permute.xlu1 %1593 }
 0x308   : > { %v1656_v16 = vsel %vm829_vm10, %v1624_v47, %v1594_v20  ;;  %2434 = vmatprep.mubr.msk.bf16.mxu1 %vm889_vm11, %v1654_v19  ;;  %v2500_v19 = vld [vmem:[%s2570_s23 + $0x20] sm:$0xff]  }
 0x309   : > { %2435 = vmatmul.mubr.msk.bf16.gmra.mrb[24].mxu1 %vm889_vm11, %v1656_v16  ;;  %v1673_v20 = vunpack.c.l.bf16 %v2500_v19 }
 0x30a   : > { %v1564_v7 = vpop.permute.xlu0 %1563 }
 0x30b   : > { %v1566_v45 = vpop.permute.xlu1 %1565  ;;  %v1626_v6 = vsel %vm795_vm9, %v3314_v9, %v1564_v7  ;;  %v2496_v9 = vld [vmem:[%s2570_s23] sm:$0xff]  }
 0x30c   : > { %v1628_v58 = vsel %vm795_vm9, %v3325_v24, %v1566_v45  ;;  %v1667_v24 = vunpack.c.l.bf16 %v2495_v27  ;;  %v1665_v42 = vunpack.c.l.bf16 %v2496_v9  ;;  %v1666_v43 = vunpack.c.h.bf16 %v2496_v9 }
 0x30d   : > { %v1659_v53 = vsel %vm829_vm10, %v1628_v58, %v3020_v23  ;;  %v1676_v58 = vunpack.c.h.bf16 %v2499_v12 }
 0x30e   : > { %v1596_v31 = vpop.permute.xlu0 %1595 }
 0x30f   : > { %v1658_v1 = vsel %vm829_vm10, %v1626_v6, %v1596_v31 }
 0x310   : > { %2438 = vmatprep.mubr.msk.bf16.mxu1 %vm889_vm11, %v1658_v1 }
 0x311   : > { %2439 = vmatmul.mubr.msk.bf16.gmra.mrb[28].mxu1 %vm889_vm11, %v1659_v53  ;;  %v1674_v53 = vunpack.c.h.bf16 %v2500_v19 }
 0x3ac   : > { %v2412_v0 = vpop.f32.mrb[0].mxu1 }
 0x3ad   : > { %v1797_v21 = vadd.f32 %v2412_v0, %v3407_v26  ;;  %v1788_v10 = vpop.f32.mrb[1].mxu1 }
 0x3ae   : > { %v1789_v28 = vadd.f32 %v3407_v26, %v1788_v10  ;;  %v2413_v23 = vpop.f32.mrb[2].mxu1 }
 0x3af   : > { %v1917_v46 = vadd.f32 %v1797_v21, %v1667_v24  ;;  %v1800_v35 = vadd.f32 %v2413_v23, %v3407_v26  ;;  %v1791_v59 = vpop.f32.mrb[3].mxu1 }
 0x3b0   : > { %v1915_v41 = vadd.f32 %v1789_v28, %v1665_v42  ;;  %v1792_v48 = vadd.f32 %v3407_v26, %v1791_v59 }
 0x3b1   : > { %v1949_v17 = vmax.f32 %v1917_v46, 0.0  ;;  %v1918_v25 = vadd.f32 %v1800_v35, %v1668_v30  ;;  %v2501_v46 = vld [vmem:[%s2570_s23 + $0x38] sm:$0xff]  }
 0x3b2   : > { %v1947_v38 = vmax.f32 %v1915_v41, 0.0  ;;  %v1916_v39 = vadd.f32 %v1792_v48, %v1666_v43  ;;  %v1679_v35 = vunpack.c.l.bf16 %v2501_v46 }
 0x3b3   : > { %v2298_v54 = vpack.c.bf16 %v1949_v17, %v1949_v17  ;;  %v1950_v2 = vmax.f32 %v1918_v25, 0.0  ;;  %v2502_v17 = vld [vmem:[%s2570_s23 + $0x30] sm:$0xff]  }
 0x3b4   : > { %v2296_v22 = vpack.c.bf16 %v1947_v38, %v1947_v38  ;;  %v1948_v33 = vmax.f32 %v1916_v39, 0.0  ;;  %v2416_v51 = vpop.f32.mrb[4].mxu1  ;;  %v1677_v25 = vunpack.c.l.bf16 %v2502_v17 }
 0x3b5   : > { %2110 = vst.msk [vmem:[%s3420_s25 + $0x8] sm:$0xf] %vm2107_vm12, %v2298_v54  ;;  %v2299_v11 = vpack.c.bf16 %v1950_v2, %v1950_v2  ;;  %v1813_v52 = vadd.f32 %v2416_v51, %v3407_v26  ;;  %v1804_v8 = vpop.f32.mrb[5].mxu1  ;;  %v1680_v2 = vunpack.c.h.bf16 %v2501_v46 }
 0x3b6   : > { %2108 = vst.msk [vmem:[%s3420_s25] sm:$0xf] %vm2107_vm12, %v2296_v22  ;;  %v2297_v56 = vpack.c.bf16 %v1948_v33, %v1948_v33  ;;  %v1805_v15 = vadd.f32 %v3407_v26, %v1804_v8  ;;  %v2417_v49 = vpop.f32.mrb[6].mxu1  ;;  %v1678_v33 = vunpack.c.h.bf16 %v2502_v17 }
 0x3b7   : > { %2111 = vst.msk [vmem:[%s3420_s25 + $0xc] sm:$0xf] %vm2107_vm12, %v2299_v11  ;;  %v1921_v34 = vadd.f32 %v1813_v52, %v1671_v40  ;;  %v1816_v3 = vadd.f32 %v2417_v49, %v3407_v26  ;;  %v1807_v37 = vpop.f32.mrb[7].mxu1 }
 0x3b8   : > { %2109 = vst.msk [vmem:[%s3420_s25 + $0x4] sm:$0xf] %vm2107_vm12, %v2297_v56  ;;  %v1919_v61 = vadd.f32 %v1805_v15, %v1669_v44  ;;  %v1808_v4 = vadd.f32 %v3407_v26, %v1807_v37 }
 0x3b9   : > { %v1953_v5 = vmax.f32 %v1921_v34, 0.0  ;;  %v1922_v63 = vadd.f32 %v1816_v3, %v1672_v55  ;;  %v2503_v34 = vld [vmem:[%s2570_s23 + $0x48] sm:$0xff]  }
 0x3ba   : > { %v1951_v13 = vmax.f32 %v1919_v61, 0.0  ;;  %v1920_v57 = vadd.f32 %v1808_v4, %v1670_v60  ;;  %v1683_v3 = vunpack.c.l.bf16 %v2503_v34 }
 0x3bb   : > { %v2302_v50 = vpack.c.bf16 %v1953_v5, %v1953_v5  ;;  %v1954_v62 = vmax.f32 %v1922_v63, 0.0  ;;  %v2504_v5 = vld [vmem:[%s2570_s23 + $0x40] sm:$0xff]  }
 0x3bc   : > { %v2300_v29 = vpack.c.bf16 %v1951_v13, %v1951_v13  ;;  %v1952_v14 = vmax.f32 %v1920_v57, 0.0  ;;  %v2420_v47 = vpop.f32.mrb[8].mxu1  ;;  %v1681_v63 = vunpack.c.l.bf16 %v2504_v5 }
 0x3bd   : > { %2114 = vst.msk [vmem:[%s3420_s25 + $0x18] sm:$0xf] %vm2107_vm12, %v2302_v50  ;;  %v2303_v16 = vpack.c.bf16 %v1954_v62, %v1954_v62  ;;  %v1829_v7 = vadd.f32 %v2420_v47, %v3407_v26  ;;  %v1820_v45 = vpop.f32.mrb[9].mxu1  ;;  %v1684_v62 = vunpack.c.h.bf16 %v2503_v34 }
 0x3be   : > { %2112 = vst.msk [vmem:[%s3420_s25 + $0x10] sm:$0xf] %vm2107_vm12, %v2300_v29  ;;  %v2301_v6 = vpack.c.bf16 %v1952_v14, %v1952_v14  ;;  %v1821_v31 = vadd.f32 %v3407_v26, %v1820_v45  ;;  %v2421_v1 = vpop.f32.mrb[10].mxu1  ;;  %v1682_v14 = vunpack.c.h.bf16 %v2504_v5 }
 0x3bf   : > { %2115 = vst.msk [vmem:[%s3420_s25 + $0x1c] sm:$0xf] %vm2107_vm12, %v2303_v16  ;;  %v1925_v27 = vadd.f32 %v1829_v7, %v1675_v36  ;;  %v1832_v24 = vadd.f32 %v2421_v1, %v3407_v26  ;;  %v1823_v0 = vpop.f32.mrb[11].mxu1 }
 0x3c0   : > { %2113 = vst.msk [vmem:[%s3420_s25 + $0x14] sm:$0xf] %vm2107_vm12, %v2301_v6  ;;  %v1923_v9 = vadd.f32 %v1821_v31, %v1673_v20  ;;  %v1824_v42 = vadd.f32 %v3407_v26, %v1823_v0 }
 0x3c1   : > { %v1957_v21 = vmax.f32 %v1925_v27, 0.0  ;;  %v1926_v10 = vadd.f32 %v1832_v24, %v1676_v58  ;;  %v2505_v27 = vld [vmem:[%s2570_s23 + $0x58] sm:$0xff]  }
 0x3c2   : > { %v1955_v30 = vmax.f32 %v1923_v9, 0.0  ;;  %v1924_v28 = vadd.f32 %v1824_v42, %v1674_v53  ;;  %v1687_v24 = vunpack.c.l.bf16 %v2505_v27 }
 0x3c3   : > { %v2306_v23 = vpack.c.bf16 %v1957_v21, %v1957_v21  ;;  %v1958_v43 = vmax.f32 %v1926_v10, 0.0  ;;  %v2506_v21 = vld [vmem:[%s2570_s23 + $0x50] sm:$0xff]  }
 0x3c4   : > { %v2304_v59 = vpack.c.bf16 %v1955_v30, %v1955_v30  ;;  %v1956_v41 = vmax.f32 %v1924_v28, 0.0  ;;  %v2424_v48 = vpop.f32.mrb[12].mxu1  ;;  %v1685_v10 = vunpack.c.l.bf16 %v2506_v21 }
 0x3c5   : > { %2118 = vst.msk [vmem:[%s3420_s25 + $0x28] sm:$0xf] %vm2107_vm12, %v2306_v23  ;;  %v2307_v38 = vpack.c.bf16 %v1958_v43, %v1958_v43  ;;  %v1845_v39 = vadd.f32 %v2424_v48, %v3407_v26  ;;  %v1836_v54 = vpop.f32.mrb[13].mxu1  ;;  %v1688_v43 = vunpack.c.h.bf16 %v2505_v27 }
 0x3c6   : > { %2116 = vst.msk [vmem:[%s3420_s25 + $0x20] sm:$0xf] %vm2107_vm12, %v2304_v59  ;;  %v2305_v32 = vpack.c.bf16 %v1956_v41, %v1956_v41  ;;  %v1837_v40 = vadd.f32 %v3407_v26, %v1836_v54  ;;  %v2425_v22 = vpop.f32.mrb[14].mxu1  ;;  %v1686_v41 = vunpack.c.h.bf16 %v2506_v21 }
 0x3c7   : > { %2119 = vst.msk [vmem:[%s3420_s25 + $0x2c] sm:$0xf] %vm2107_vm12, %v2307_v38  ;;  %v1929_v51 = vadd.f32 %v1845_v39, %v1679_v35  ;;  %v1848_v18 = vadd.f32 %v2425_v22, %v3407_v26  ;;  %v1839_v44 = vpop.f32.mrb[15].mxu1 }
 0x3c8   : > { %2117 = vst.msk [vmem:[%s3420_s25 + $0x24] sm:$0xf] %vm2107_vm12, %v2305_v32  ;;  %v1927_v11 = vadd.f32 %v1837_v40, %v1677_v25  ;;  %v1840_v52 = vadd.f32 %v3407_v26, %v1839_v44 }
 0x3c9   : > { %v1961_v8 = vmax.f32 %v1929_v51, 0.0  ;;  %v1930_v55 = vadd.f32 %v1848_v18, %v1680_v2  ;;  %v2507_v51 = vld [vmem:[%s2570_s23 + $0x68] sm:$0xff]  }
 0x3ca   : > { %v1959_v56 = vmax.f32 %v1927_v11, 0.0  ;;  %v1928_v15 = vadd.f32 %v1840_v52, %v1678_v33  ;;  %v1691_v18 = vunpack.c.l.bf16 %v2507_v51 }
 0x3cb   : > { %v2310_v49 = vpack.c.bf16 %v1961_v8, %v1961_v8  ;;  %v1962_v60 = vmax.f32 %v1930_v55, 0.0  ;;  %v2508_v8 = vld [vmem:[%s2570_s23 + $0x60] sm:$0xff]  }
 0x3cc   : > { %v2308_v37 = vpack.c.bf16 %v1959_v56, %v1959_v56  ;;  %v1960_v61 = vmax.f32 %v1928_v15, 0.0  ;;  %v2428_v4 = vpop.f32.mrb[16].mxu1  ;;  %v1689_v55 = vunpack.c.l.bf16 %v2508_v8 }
 0x3cd   : > { %2122 = vst.msk [vmem:[%s3420_s25 + $0x38] sm:$0xf] %vm2107_vm12, %v2310_v49  ;;  %v2311_v13 = vpack.c.bf16 %v1962_v60, %v1962_v60  ;;  %v1861_v57 = vadd.f32 %v2428_v4, %v3407_v26  ;;  %v1852_v50 = vpop.f32.mrb[17].mxu1  ;;  %v1692_v60 = vunpack.c.h.bf16 %v2507_v51 }
 0x3ce   : > { %2120 = vst.msk [vmem:[%s3420_s25 + $0x30] sm:$0xf] %vm2107_vm12, %v2308_v37  ;;  %v2309_v12 = vpack.c.bf16 %v1960_v61, %v1960_v61  ;;  %v1853_v36 = vadd.f32 %v3407_v26, %v1852_v50  ;;  %v2429_v29 = vpop.f32.mrb[18].mxu1  ;;  %v1690_v61 = vunpack.c.h.bf16 %v2508_v8 }
 0x3cf   : > { %2123 = vst.msk [vmem:[%s3420_s25 + $0x3c] sm:$0xf] %vm2107_vm12, %v2311_v13  ;;  %v1933_v47 = vadd.f32 %v1861_v57, %v1683_v3  ;;  %v1864_v19 = vadd.f32 %v2429_v29, %v3407_v26  ;;  %v1855_v20 = vpop.f32.mrb[19].mxu1 }
 0x3d0   : > { %2121 = vst.msk [vmem:[%s3420_s25 + $0x34] sm:$0xf] %vm2107_vm12, %v2309_v12  ;;  %v1931_v16 = vadd.f32 %v1853_v36, %v1681_v63  ;;  %v1856_v7 = vadd.f32 %v3407_v26, %v1855_v20 }
 0x3d1   : > { %v1965_v45 = vmax.f32 %v1933_v47, 0.0  ;;  %v1934_v58 = vadd.f32 %v1864_v19, %v1684_v62  ;;  %v2509_v47 = vld [vmem:[%s2570_s23 + $0x78] sm:$0xff]  }
 0x3d2   : > { %v1963_v6 = vmax.f32 %v1931_v16, 0.0  ;;  %v1932_v31 = vadd.f32 %v1856_v7, %v1682_v14  ;;  %v1695_v19 = vunpack.c.l.bf16 %v2509_v47 }
 0x3d3   : > { %v2314_v1 = vpack.c.bf16 %v1965_v45, %v1965_v45  ;;  %v1966_v53 = vmax.f32 %v1934_v58, 0.0  ;;  %v2510_v45 = vld [vmem:[%s2570_s23 + $0x70] sm:$0xff]  }
 0x3d4   : > { %v2312_v0 = vpack.c.bf16 %v1963_v6, %v1963_v6  ;;  %v1964_v9 = vmax.f32 %v1932_v31, 0.0  ;;  %v2432_v42 = vpop.f32.mrb[20].mxu1  ;;  %v1693_v58 = vunpack.c.l.bf16 %v2510_v45 }
 0x3d5   : > { %2126 = vst.msk [vmem:[%s3420_s25 + $0x48] sm:$0xf] %vm2107_vm12, %v2314_v1  ;;  %v2315_v30 = vpack.c.bf16 %v1966_v53, %v1966_v53  ;;  %v1877_v28 = vadd.f32 %v2432_v42, %v3407_v26  ;;  %v1868_v23 = vpop.f32.mrb[21].mxu1  ;;  %v1696_v53 = vunpack.c.h.bf16 %v2509_v47 }
 0x3d6   : > { %2124 = vst.msk [vmem:[%s3420_s25 + $0x40] sm:$0xf] %vm2107_vm12, %v2312_v0  ;;  %v2313_v46 = vpack.c.bf16 %v1964_v9, %v1964_v9  ;;  %v1869_v35 = vadd.f32 %v3407_v26, %v1868_v23  ;;  %v2433_v59 = vpop.f32.mrb[22].mxu1  ;;  %v1694_v9 = vunpack.c.h.bf16 %v2510_v45 }
 0x3d7   : > { %2127 = vst.msk [vmem:[%s3420_s25 + $0x4c] sm:$0xf] %vm2107_vm12, %v2315_v30  ;;  %v1937_v48 = vadd.f32 %v1877_v28, %v1687_v24  ;;  %v1880_v17 = vadd.f32 %v2433_v59, %v3407_v26  ;;  %v1871_v25 = vpop.f32.mrb[23].mxu1 }
 0x3d8   : > { %2125 = vst.msk [vmem:[%s3420_s25 + $0x44] sm:$0xf] %vm2107_vm12, %v2313_v46  ;;  %v1935_v38 = vadd.f32 %v1869_v35, %v1685_v10  ;;  %v1872_v39 = vadd.f32 %v3407_v26, %v1871_v25 }
 0x3d9   : > { %v1969_v54 = vmax.f32 %v1937_v48, 0.0  ;;  %v1938_v2 = vadd.f32 %v1880_v17, %v1688_v43 }
 0x3da   : > { %v1967_v32 = vmax.f32 %v1935_v38, 0.0  ;;  %v1936_v40 = vadd.f32 %v1872_v39, %v1686_v41 }
 0x3db   : > { %v2318_v22 = vpack.c.bf16 %v1969_v54, %v1969_v54  ;;  %v1970_v33 = vmax.f32 %v1938_v2, 0.0 }
 0x3dc   : > { %v2316_v44 = vpack.c.bf16 %v1967_v32, %v1967_v32  ;;  %v1968_v11 = vmax.f32 %v1936_v40, 0.0  ;;  %v2436_v52 = vpop.f32.mrb[24].mxu1 }
 0x3dd   : > { %2130 = vst.msk [vmem:[%s3420_s25 + $0x58] sm:$0xf] %vm2107_vm12, %v2318_v22  ;;  %v2319_v56 = vpack.c.bf16 %v1970_v33, %v1970_v33  ;;  %v1893_v15 = vadd.f32 %v2436_v52, %v3407_v26  ;;  %v1884_v49 = vpop.f32.mrb[25].mxu1 }
 0x3de   : > { %2128 = vst.msk [vmem:[%s3420_s25 + $0x50] sm:$0xf] %vm2107_vm12, %v2316_v44  ;;  %v2317_v34 = vpack.c.bf16 %v1968_v11, %v1968_v11  ;;  %v1885_v3 = vadd.f32 %v3407_v26, %v1884_v49  ;;  %v2437_v37 = vpop.f32.mrb[26].mxu1 }
 0x3df   : > { %2131 = vst.msk [vmem:[%s3420_s25 + $0x5c] sm:$0xf] %vm2107_vm12, %v2319_v56  ;;  %v1941_v4 = vadd.f32 %v1893_v15, %v1691_v18  ;;  %v1896_v5 = vadd.f32 %v2437_v37, %v3407_v26  ;;  %v1887_v63 = vpop.f32.mrb[27].mxu1 }
 0x3e0   : > { %2129 = vst.msk [vmem:[%s3420_s25 + $0x54] sm:$0xf] %vm2107_vm12, %v2317_v34  ;;  %v1939_v13 = vadd.f32 %v1885_v3, %v1689_v55  ;;  %v1888_v57 = vadd.f32 %v3407_v26, %v1887_v63 }
 0x3e1   : > { %v1973_v50 = vmax.f32 %v1941_v4, 0.0  ;;  %v1942_v62 = vadd.f32 %v1896_v5, %v1692_v60 }
 0x3e2   : > { %v1971_v12 = vmax.f32 %v1939_v13, 0.0  ;;  %v1940_v36 = vadd.f32 %v1888_v57, %v1690_v61 }
 0x3e3   : > { %v2322_v29 = vpack.c.bf16 %v1973_v50, %v1973_v50  ;;  %v1974_v14 = vmax.f32 %v1942_v62, 0.0 }
 0x3e4   : > { %v2320_v20 = vpack.c.bf16 %v1971_v12, %v1971_v12  ;;  %v1972_v16 = vmax.f32 %v1940_v36, 0.0  ;;  %v2440_v7 = vpop.f32.mrb[28].mxu1 }
 0x3e5   : > { %2134 = vst.msk [vmem:[%s3420_s25 + $0x68] sm:$0xf] %vm2107_vm12, %v2322_v29  ;;  %v2323_v6 = vpack.c.bf16 %v1974_v14, %v1974_v14  ;;  %v1909_v31 = vadd.f32 %v2440_v7, %v3407_v26  ;;  %v1900_v1 = vpop.f32.mrb[29].mxu1 }
 0x3e6   : > { %2132 = vst.msk [vmem:[%s3420_s25 + $0x60] sm:$0xf] %vm2107_vm12, %v2320_v20  ;;  %v2321_v27 = vpack.c.bf16 %v1972_v16, %v1972_v16  ;;  %v1901_v24 = vadd.f32 %v3407_v26, %v1900_v1  ;;  %v2441_v0 = vpop.f32.mrb[30].mxu1 }
 0x3e7   : > { %2135 = vst.msk [vmem:[%s3420_s25 + $0x6c] sm:$0xf] %vm2107_vm12, %v2323_v6  ;;  %v1945_v42 = vadd.f32 %v1909_v31, %v1695_v19  ;;  %v1912_v21 = vadd.f32 %v2441_v0, %v3407_v26  ;;  %v1903_v10 = vpop.f32.mrb[31].mxu1 }
 0x3e8   : > { %2133 = vst.msk [vmem:[%s3420_s25 + $0x64] sm:$0xf] %vm2107_vm12, %v2321_v27  ;;  %v1943_v30 = vadd.f32 %v1901_v24, %v1693_v58  ;;  %v1904_v28 = vadd.f32 %v3407_v26, %v1903_v10 }
 0x3e9   : > { %v1977_v23 = vmax.f32 %v1945_v42, 0.0  ;;  %v1946_v43 = vadd.f32 %v1912_v21, %v1696_v53 }
 0x3ea   : > { %v1975_v46 = vmax.f32 %v1943_v30, 0.0  ;;  %v1944_v35 = vadd.f32 %v1904_v28, %v1694_v9 }
 0x3eb   : > { %v2326_v59 = vpack.c.bf16 %v1977_v23, %v1977_v23  ;;  %v1978_v41 = vmax.f32 %v1946_v43, 0.0 }
 0x3ec   : > { %v2324_v48 = vpack.c.bf16 %v1975_v46, %v1975_v46  ;;  %v1976_v17 = vmax.f32 %v1944_v35, 0.0 }
 0x3ed   : > { %2138 = vst.msk [vmem:[%s3420_s25 + $0x78] sm:$0xf] %vm2107_vm12, %v2326_v59  ;;  %v2327_v25 = vpack.c.bf16 %v1978_v41, %v1978_v41 }
 0x3ee   : > { %2136 = vst.msk [vmem:[%s3420_s25 + $0x70] sm:$0xf] %vm2107_vm12, %v2324_v48  ;;  %v2325_v38 = vpack.c.bf16 %v1976_v17, %v1976_v17 }
 0x3ef   : > { %2139 = vst.msk [vmem:[%s3420_s25 + $0x7c] sm:$0xf] %vm2107_vm12, %v2327_v25 }
 0x3f0   : > { %2137 = vst.msk [vmem:[%s3420_s25 + $0x74] sm:$0xf] %vm2107_vm12, %v2325_v38 }
 0x3f1 PF: > { %s15_s18 = sadd.s32 1, %s2517_s18  }
 0x3f2   : > { %p12_p4 = scmp.ge.s32.totalorder %s15_s18, 4  }
 0x3f4   :  { %14 = sbr.rel (!%p12_p4) target bundleno = 1 (0x1), region = 70 }

</bundles_post_ra>
